<compile_context>
chip_gen: v7x
topology: tpu7x:2x2x1
jax: 0.10.0
libtpu: 0.0.40
codegen_flags: <defaults>
</compile_context>

<pallas_src>
import jax
import jax.numpy as jnp
from jax.experimental import pallas as pl
from jax.experimental.pallas import tpu as pltpu


def _round_up(n, m):
    return pl.cdiv(n, m) * m


def mlp_kernel(x_ref, w0_ref, b0_ref, w1_ref, b1_ref, w2t_ref, b2_ref, o_ref):
    """Fused 30->16->16->1 MLP for one batch tile.

    Matmul operands are fed to the MXU in bf16 (f32 accumulation via
    preferred_element_type); bias adds and ReLUs stay in f32 on the VPU
    (keeps v5e's non-bf16 VPU happy, negligible elsewhere).
    """
    x = x_ref[...]

    h0 = jnp.dot(x.astype(jnp.bfloat16), w0_ref[...].astype(jnp.bfloat16),
                 preferred_element_type=jnp.float32)
    h0 = jnp.maximum(h0 + b0_ref[...], 0.0)

    h1 = jnp.dot(h0.astype(jnp.bfloat16), w1_ref[...].astype(jnp.bfloat16),
                 preferred_element_type=jnp.float32)
    h1 = jnp.maximum(h1 + b1_ref[...], 0.0)

    # Final 16 -> 1 layer: contract the 16-wide feature axis of h1 against the
    # [1, 16] weight row (q@k^T-style contraction).  The result is (1, TILE_B):
    # batch sits in the lane dimension, so the store is lane-dense instead of a
    # masked (TILE_B, 1) column.
    logit = jax.lax.dot_general(
        w2t_ref[...].astype(jnp.bfloat16), h1.astype(jnp.bfloat16),
        dimension_numbers=(((1,), (1,)), ((), ())),
        preferred_element_type=jnp.float32,
    ) + b2_ref[...]

    o_ref[...] = logit[None]          # (1, 1, TILE_B) output block


def classificador_forward(x, params, *, max_tile_b=1024):
    w0, b0, w1, b1, w2t, b2 = params
    B, F = x.shape
    assert F == 30, F

    # Batch tile: multiple of 128 (lane-dense output), as large as reasonable.
    # x tile is TILE_B*30*4 B (~120 KB) x2 buffers -> tiny vs any chip's VMEM,
    # so one budget works for v5e / v6e / v7x.
    tile_b = min(max_tile_b, _round_up(max(B, 1), 128))
    padded_b = _round_up(B, tile_b)
    if padded_b != B:
        x = jnp.pad(x, ((0, padded_b - B), (0, 0)))
    num_tiles = padded_b // tile_b

    def const_spec(arr):
        # Full-array block, constant index map -> stays VMEM-resident across
        # the batch grid (no re-DMA per tile).
        zeros = (0,) * arr.ndim
        return pl.BlockSpec(arr.shape, lambda i, _z=zeros: _z)

    weight_bytes = sum(int(p.size) * p.dtype.itemsize for p in params)
    cost = pl.CostEstimate(
        flops=2 * padded_b * (30 * 16 + 16 * 16 + 16),
        transcendentals=0,
        bytes_accessed=padded_b * (30 + 1) * 4 + weight_bytes,
    )

    out = pl.pallas_call(
        mlp_kernel,
        out_shape=jax.ShapeDtypeStruct((num_tiles, 1, tile_b), jnp.float32),
        grid=(num_tiles,),                               # pipelined over batch tiles
        in_specs=[
            pl.BlockSpec((tile_b, 30), lambda i: (i, 0)),  # X: tiled over batch
            const_spec(w0), const_spec(b0),
            const_spec(w1), const_spec(b1),
            const_spec(w2t), const_spec(b2),
        ],
        out_specs=pl.BlockSpec((1, 1, tile_b), lambda i: (i, 0, 0)),
        compiler_params=pltpu.CompilerParams(
            dimension_semantics=("parallel",),   # shards tiles across both TCs on v7x
            vmem_limit_bytes=32 * 1024 * 1024,
        ),
        cost_estimate=cost,
    )(x, w0, b0, w1, b1, w2t, b2)

    # (num_tiles, 1, tile_b) -> (padded_b, 1), drop batch padding.
    return out.reshape(padded_b, 1)[:B]


def init_params(key):
    """Mirror the PyTorch module:
    - weights: torch.nn.init.uniform_ default range (0, 1)
    - biases:  nn.Linear default U(-1/sqrt(fan_in), +1/sqrt(fan_in))
    w0/w1 stored transposed ([in, out]); w2 kept in PyTorch orientation [1, 16].
    """
    k = jax.random.split(key, 6)
    w0 = jax.random.uniform(k[0], (30, 16), jnp.float32, 0.0, 1.0)
    b0 = jax.random.uniform(k[1], (1, 16), jnp.float32,
                            -1.0 / jnp.sqrt(30.0), 1.0 / jnp.sqrt(30.0))
    w1 = jax.random.uniform(k[2], (16, 16), jnp.float32, 0.0, 1.0)
    b1 = jax.random.uniform(k[3], (1, 16), jnp.float32, -0.25, 0.25)
    w2t = jax.random.uniform(k[4], (1, 16), jnp.float32, 0.0, 1.0)
    b2 = jax.random.uniform(k[5], (1, 1), jnp.float32, -0.25, 0.25)
    return (w0, b0, w1, b1, w2t, b2)


def reference_forward(x, params):
    """Pure-JAX reference using the same bf16-operand / f32-accumulate matmuls."""
    w0, b0, w1, b1, w2t, b2 = params
    bf = jnp.bfloat16
    h0 = jnp.maximum(jnp.dot(x.astype(bf), w0.astype(bf),
                             preferred_element_type=jnp.float32) + b0, 0.0)
    h1 = jnp.maximum(jnp.dot(h0.astype(bf), w1.astype(bf),
                             preferred_element_type=jnp.float32) + b1, 0.0)
    return jnp.dot(h1.astype(bf), w2t.T.astype(bf),
                   preferred_element_type=jnp.float32) + b2


if __name__ == "__main__":
    key = jax.random.PRNGKey(0)
    k_x, k_p = jax.random.split(key)
    B = 2000  # exercises batch tiling (2 tiles of 1024) and tail padding
    x = jax.random.normal(k_x, (B, 30), jnp.float32)
    params = init_params(k_p)

    out = jax.block_until_ready(classificador_forward(x, params))
    ref = reference_forward(x, params)

    assert out.shape == (B, 1), out.shape
    assert jnp.allclose(out, ref, atol=5e-3, rtol=5e-3), \
        float(jnp.max(jnp.abs(out - ref)))
    print("KERNEL_OK")
</pallas_src>

<mosaic_0001>
module attributes {stable_mosaic.version = 11 : i64} {
  func.func @mlp_kernel(%arg0: i32, %arg1: memref<1024x30xf32, #tpu.memory_space<vmem>>, %arg2: memref<30x16xf32, #tpu.memory_space<vmem>>, %arg3: memref<1x16xf32, #tpu.memory_space<vmem>>, %arg4: memref<16x16xf32, #tpu.memory_space<vmem>>, %arg5: memref<1x16xf32, #tpu.memory_space<vmem>>, %arg6: memref<1x16xf32, #tpu.memory_space<vmem>>, %arg7: memref<1x1xf32, #tpu.memory_space<vmem>>, %arg8: memref<1x1x1024xf32, #tpu.memory_space<vmem>>) attributes {dimension_semantics = [#tpu.dimension_semantics<parallel>], iteration_bounds = array<i64: 2>, scalar_prefetch = 0 : i64, scratch_operands = 0 : i64, tpu.core_type = #tpu.core_type<tc>, window_params = [{transform_indices = @transform_0, window_bounds = array<i64: 1024, 30>}, {pipeline_mode = #tpu.pipeline_mode<synchronous>, transform_indices = @transform_1, window_bounds = array<i64: 30, 16>}, {pipeline_mode = #tpu.pipeline_mode<synchronous>, transform_indices = @transform_2, window_bounds = array<i64: 1, 16>}, {pipeline_mode = #tpu.pipeline_mode<synchronous>, transform_indices = @transform_3, window_bounds = array<i64: 16, 16>}, {pipeline_mode = #tpu.pipeline_mode<synchronous>, transform_indices = @transform_4, window_bounds = array<i64: 1, 16>}, {pipeline_mode = #tpu.pipeline_mode<synchronous>, transform_indices = @transform_5, window_bounds = array<i64: 1, 16>}, {pipeline_mode = #tpu.pipeline_mode<synchronous>, transform_indices = @transform_6, window_bounds = array<i64: 1, 1>}, {transform_indices = @transform_7, window_bounds = array<i64: 1, 1, 1024>}]} {
    %c0 = arith.constant 0 : index
    %c0_0 = arith.constant 0 : index
    %0 = vector.load %arg1[%c0, %c0_0] : memref<1024x30xf32, #tpu.memory_space<vmem>>, vector<1024x30xf32>
    %1 = arith.truncf %0 : vector<1024x30xf32> to vector<1024x30xbf16>
    %c0_1 = arith.constant 0 : index
    %c0_2 = arith.constant 0 : index
    %2 = vector.load %arg2[%c0_1, %c0_2] : memref<30x16xf32, #tpu.memory_space<vmem>>, vector<30x16xf32>
    %3 = arith.truncf %2 : vector<30x16xf32> to vector<30x16xbf16>
    %cst = arith.constant dense<0.000000e+00> : vector<1024x16xf32>
    %4 = tpu.matmul %1, %3, %cst {dimension_numbers = #tpu.dot_dimension_numbers<[1], [0], [0], [1], [0, 0, 1, 1], [], []>} : vector<1024x30xbf16>, vector<30x16xbf16>, vector<1024x16xf32> -> vector<1024x16xf32>
    %c0_3 = arith.constant 0 : index
    %c0_4 = arith.constant 0 : index
    %5 = vector.load %arg3[%c0_3, %c0_4] : memref<1x16xf32, #tpu.memory_space<vmem>>, vector<1x16xf32>
    %6 = vector.broadcast %5 : vector<1x16xf32> to vector<1024x16xf32>
    %7 = arith.addf %4, %6 : vector<1024x16xf32>
    %cst_5 = arith.constant 0.000000e+00 : f32
    %8 = vector.broadcast %cst_5 : f32 to vector<1024x16xf32>
    %9 = arith.maximumf %7, %8 : vector<1024x16xf32>
    %10 = arith.truncf %9 : vector<1024x16xf32> to vector<1024x16xbf16>
    %c0_6 = arith.constant 0 : index
    %c0_7 = arith.constant 0 : index
    %11 = vector.load %arg4[%c0_6, %c0_7] : memref<16x16xf32, #tpu.memory_space<vmem>>, vector<16x16xf32>
    %12 = arith.truncf %11 : vector<16x16xf32> to vector<16x16xbf16>
    %cst_8 = arith.constant dense<0.000000e+00> : vector<1024x16xf32>
    %13 = tpu.matmul %10, %12, %cst_8 {dimension_numbers = #tpu.dot_dimension_numbers<[1], [0], [0], [1], [0, 0, 1, 1], [], []>} : vector<1024x16xbf16>, vector<16x16xbf16>, vector<1024x16xf32> -> vector<1024x16xf32>
    %c0_9 = arith.constant 0 : index
    %c0_10 = arith.constant 0 : index
    %14 = vector.load %arg5[%c0_9, %c0_10] : memref<1x16xf32, #tpu.memory_space<vmem>>, vector<1x16xf32>
    %15 = vector.broadcast %14 : vector<1x16xf32> to vector<1024x16xf32>
    %16 = arith.addf %13, %15 : vector<1024x16xf32>
    %cst_11 = arith.constant 0.000000e+00 : f32
    %17 = vector.broadcast %cst_11 : f32 to vector<1024x16xf32>
    %18 = arith.maximumf %16, %17 : vector<1024x16xf32>
    %c0_12 = arith.constant 0 : index
    %c0_13 = arith.constant 0 : index
    %19 = vector.load %arg6[%c0_12, %c0_13] : memref<1x16xf32, #tpu.memory_space<vmem>>, vector<1x16xf32>
    %20 = arith.truncf %19 : vector<1x16xf32> to vector<1x16xbf16>
    %21 = arith.truncf %18 : vector<1024x16xf32> to vector<1024x16xbf16>
    %cst_14 = arith.constant dense<0.000000e+00> : vector<1x1024xf32>
    %22 = tpu.matmul %20, %21, %cst_14 {dimension_numbers = #tpu.dot_dimension_numbers<[1], [1], [0], [0], [0, 0, 1, 0], [], []>} : vector<1x16xbf16>, vector<1024x16xbf16>, vector<1x1024xf32> -> vector<1x1024xf32>
    %c0_15 = arith.constant 0 : index
    %c0_16 = arith.constant 0 : index
    %23 = vector.load %arg7[%c0_15, %c0_16] : memref<1x1xf32, #tpu.memory_space<vmem>>, vector<1x1xf32>
    %24 = vector.broadcast %23 : vector<1x1xf32> to vector<1x1024xf32>
    %25 = arith.addf %22, %24 : vector<1x1024xf32>
    %26 = vector.shape_cast %25 : vector<1x1024xf32> to vector<1x1x1024xf32>
    %c0_17 = arith.constant 0 : index
    %c0_18 = arith.constant 0 : index
    %c0_19 = arith.constant 0 : index
    %27 = vector.load %arg8[%c0_17, %c0_18, %c0_19] : memref<1x1x1024xf32, #tpu.memory_space<vmem>>, vector<1x1x1024xf32>
    tpu.vector_store %arg8[%c0_17, %c0_18, %c0_19], %26 {strides = array<i32>} : memref<1x1x1024xf32, #tpu.memory_space<vmem>>, vector<1x1x1024xf32>,
    return
  }
  func.func @transform_0(%arg0: i32) -> (i32, i32) {
    %c0_i32 = arith.constant 0 : i32
    %c0_i32_0 = arith.constant 0 : i32
    return %arg0, %c0_i32 : i32, i32
  }
  func.func @transform_1(%arg0: i32) -> (i32, i32) {
    %c0_i32 = arith.constant 0 : i32
    %c0_i32_0 = arith.constant 0 : i32
    %c0_i32_1 = arith.constant 0 : i32
    return %c0_i32, %c0_i32_0 : i32, i32
  }
  func.func @transform_2(%arg0: i32) -> (i32, i32) {
    %c0_i32 = arith.constant 0 : i32
    %c0_i32_0 = arith.constant 0 : i32
    %c0_i32_1 = arith.constant 0 : i32
    return %c0_i32, %c0_i32_0 : i32, i32
  }
  func.func @transform_3(%arg0: i32) -> (i32, i32) {
    %c0_i32 = arith.constant 0 : i32
    %c0_i32_0 = arith.constant 0 : i32
    %c0_i32_1 = arith.constant 0 : i32
    return %c0_i32, %c0_i32_0 : i32, i32
  }
  func.func @transform_4(%arg0: i32) -> (i32, i32) {
    %c0_i32 = arith.constant 0 : i32
    %c0_i32_0 = arith.constant 0 : i32
    %c0_i32_1 = arith.constant 0 : i32
    return %c0_i32, %c0_i32_0 : i32, i32
  }
  func.func @transform_5(%arg0: i32) -> (i32, i32) {
    %c0_i32 = arith.constant 0 : i32
    %c0_i32_0 = arith.constant 0 : i32
    %c0_i32_1 = arith.constant 0 : i32
    return %c0_i32, %c0_i32_0 : i32, i32
  }
  func.func @transform_6(%arg0: i32) -> (i32, i32) {
    %c0_i32 = arith.constant 0 : i32
    %c0_i32_0 = arith.constant 0 : i32
    %c0_i32_1 = arith.constant 0 : i32
    return %c0_i32, %c0_i32_0 : i32, i32
  }
  func.func @transform_7(%arg0: i32) -> (i32, i32, i32) {
    %c0_i32 = arith.constant 0 : i32
    %c0_i32_0 = arith.constant 0 : i32
    %c0_i32_1 = arith.constant 0 : i32
    return %arg0, %c0_i32, %c0_i32_0 : i32, i32, i32
  }
}

</mosaic_0001>

<bundles_post_ra>
// kernel: tpu_custom_call.1
= control target key start
LH: loop header
LB: loop body
LE: loop exit
PB: predicated region body
PF: predicated region fallthrough
CT: control target
= control target key end

     0   :  { %s4502_s0 = inlined_call_operand.vmem [shape: f32[2048,30], index: 0, kind: input, shape index: {}]   ;;  %s4503_s1 = inlined_call_operand.vmem [shape: f32[30,16], index: 1, kind: input, shape index: {}]   ;;  %s4504_s2 = inlined_call_operand.vmem [shape: f32[1,16], index: 2, kind: input, shape index: {}]   ;;  %s4505_s3 = inlined_call_operand.vmem [shape: f32[16,16], index: 3, kind: input, shape index: {}]   ;;  %s4506_s4 = inlined_call_operand.vmem [shape: f32[1,16], index: 4, kind: input, shape index: {}]   ;;  %s4507_s5 = inlined_call_operand.vmem [shape: f32[1,16], index: 5, kind: input, shape index: {}]   ;;  %s4508_s6 = inlined_call_operand.<no memory space> [shape: f32[1,1], index: 6, kind: input, shape index: {}]   ;;  %s4509_s7 = inlined_call_operand.hbm [shape: f32[2,1,1024], index: 7, kind: output, shape index: {}]  }
   0x1   :  { %v12_v0 = vstv %s4508_s6 }
   0x2   :  { %13 = vst [vmem:[#allocation2] sm:$0x1] %v12_v0 }
   0x3   :  { %14 = vsyncpa [#allocation4], 0 }
   0x4   :  { %16 = vsyncpa [#allocation4 + $0x1], 0  ;;  %s3664_s26 = smov 0   ;;  %s3666_s27 = smov 0  }
   0x5   :  { %s3668_s28 = smov 0   ;;  %s3670_s29 = smov 0  }
   0x6 LB: > { %s2864_s6 = sadd.s32 4294967295, %s3616_s29   ;;  %s2865_s30 = sadd.s32 4294967294, %s3616_s29   ;;  %s3616_s29 = sphi %s3670_s29, %s4515_s29   ;;  %s3612_s28 = sphi %s3668_s28, %s4514_s28   ;;  %s3608_s27 = sphi %s3666_s27, %s4513_s27   ;;  %s3604_s26 = sphi %s3664_s26, %s4512_s26  }
   0x7   : > { %s3687_s8 = sadd.s32 1, %s3616_s29   ;;  %s181_s9 = sadd.s32 1, %s3612_s28 }
   0x8   : > { %s178_s10 = ssub.s32 %s3616_s29, %s3687_s8  ;;  %p191_p0 = scmp.ne.s32.totalorder %s3612_s28, %s3608_s27 }
   0x9   : > { %p179_p1 = scmp.eq.s32.totalorder %s178_s10, 0  ;;  %p192_p2 = scmp.eq.s32.totalorder %s2864_s6, 1 }
   0xa   : > { %p197_p3 = scmp.ne.s32.totalorder %s3608_s27, %s3604_s26  ;;  %p198_p4 = scmp.eq.s32.totalorder %s2865_s30, 1 }
   0xb   : > { %s3697_s11 = scalar_select %p179_p1, %s3612_s28, %s181_s9  }
   0xc   : > { %p3699_p5 = por %p192_p2, %p191_p0  ;;  %p3703_p6 = por %p198_p4, %p197_p3 }
   0xd   : > { %p2868_p7 = scmp.ge.s32.totalorder %s3616_s29, 1  ;;  %p243_p8 = scmp.lt.s32.totalorder %s3616_s29, 3 }
   0xf   : > { %p244_p9 = pnand %p2868_p7, %p243_p8 }
  0x10   : > { %v474_v1 = vld [vmem:[%s4503_s1] sm:$0xff] (!%p244_p9)  ;;  %v475_v2 = vld [vmem:[%s4503_s1 + $0x8] sm:$0xff] (!%p244_p9)  ;;  %v476_v3 = vld [vmem:[%s4503_s1 + $0x10] sm:$0xff] (!%p244_p9)  ;;  %s3718_s20 = sshll.u32 (!%p244_p9), %s2864_s6, 7  ;;  %vm680_vm0 = vcmask (!%p244_p9), 1046528   ;;  %vm487_vm1 = vcmask (!%p244_p9), 244736  }
  0x11   : > { %247 = sbr.rel (%p244_p9) target bundleno = 1002 (0x3ea), region = 48  ;;  %v478_v4 = vpack.c.bf16 (!%p244_p9), %v475_v2, %v474_v1  ;;  %v477_v5 = vld [vmem:[%s4503_s1 + $0x18] sm:$0x3f] (!%p244_p9)  ;;  %p276_p10 = scmp.lt.s32.totalorder (!%p244_p9), %s3718_s20, 255  ;;  %vm1431_vm2 = vcmask (!%p244_p9), 130048  }
  0x12   : > { %v479_v6 = vpack.c.bf16 (!%p244_p9), %v477_v5, %v476_v3  ;;  %s4460_s17 = scalar_lea.hbm (!%p244_p9), %s4509_s7, %s3718_s20  ;;  %s3620_s21 = smov (!%p244_p9), [#allocation3]  }
  0x13   : > { %3215 = vmatprep.subr.bf16.mxu0 (!%p244_p9), %v478_v4  ;;  %s3558_s22 = sshll.u32 (!%p244_p9), %s3620_s21, 4  ;;  %s3559_s22 = int_to_ptr.vmem [resolvable:$false] %s3558_s22 }
  0x14   : > { %3216 = vmatpush3.bf16.msra.mxu0 (!%p244_p9), %v478_v4  ;;  %v682_v7 = vsel (!%p244_p9), %vm680_vm0, %v479_v6, 0 }
  0x15   : > { %3477 = vmatprep.subr.msk.bf16.mxu0 (!%p244_p9), %vm680_vm0, %v479_v6 }
  0x18   : > { %s277_s23 = scalar_select %p276_p10, %s3718_s20, 255  ;;  %3218 = vmatpush3.bf16.msra.mxu0 %v682_v7 }
  0x1a   : > { %s2871_s24 = sshll.u32 %s277_s23, 3  ;;  %s3560_s23 = scalar_lea.vmem %s3559_s22, 256 }
  0x1b   : > { %s3728_s6 = scalar_lea.vmem %s4502_s0, %s2871_s24 }
  0x1c   : > { %v282_v8 = vld [vmem:[%s3728_s6] sm:$0xff]  ;;  %v283_v9 = vld [vmem:[%s3728_s6 + $0x8] sm:$0xff]  ;;  %v284_v10 = vld [vmem:[%s3728_s6 + $0x10] sm:$0xff] }
  0x1d   : > { %v410_v11 = vpack.c.bf16 %v283_v9, %v282_v8  ;;  %v285_v12 = vld [vmem:[%s3728_s6 + $0x18] sm:$0xff]  ;;  %v286_v13 = vld [vmem:[%s3728_s6 + $0x20] sm:$0xff]  ;;  %v287_v14 = vld [vmem:[%s3728_s6 + $0x28] sm:$0xff] }
  0x1e   : > { %v411_v15 = vpack.c.bf16 %v285_v12, %v284_v10  ;;  %v412_v16 = vpack.c.bf16 %v287_v14, %v286_v13  ;;  %v288_v17 = vld [vmem:[%s3728_s6 + $0x30] sm:$0xff]  ;;  %v289_v18 = vld [vmem:[%s3728_s6 + $0x38] sm:$0xff]  ;;  %v290_v19 = vld [vmem:[%s3728_s6 + $0x40] sm:$0xff] }
  0x1f   : > { %3219 = vmatprep.mubr.msk.bf16.mxu0 %vm487_vm1, %v410_v11  ;;  %v291_v20 = vld [vmem:[%s3728_s6 + $0x48] sm:$0xff]  ;;  %v413_v21 = vpack.c.bf16 %v289_v18, %v288_v17  ;;  %v292_v23 = vld [vmem:[%s3728_s6 + $0x50] sm:$0xff]  ;;  %v293_v24 = vld [vmem:[%s3728_s6 + $0x58] sm:$0xff] }
  0x20   : > { %3220 = vmatmul.mubr.msk.bf16.vlgmr.msra.gmra.mrb[0].mxu0 %vm487_vm1, %v411_v15  ;;  %v414_v22 = vpack.c.bf16 %v291_v20, %v290_v19  ;;  %v294_v25 = vld [vmem:[%s3728_s6 + $0x60] sm:$0xff]  ;;  %v295_v26 = vld [vmem:[%s3728_s6 + $0x68] sm:$0xff]  ;;  %v415_v27 = vpack.c.bf16 %v293_v24, %v292_v23  ;;  %v296_v29 = vld [vmem:[%s3728_s6 + $0x70] sm:$0xff] }
  0x21   : > { %3223 = vmatprep.mubr.msk.bf16.mxu0 %vm487_vm1, %v412_v16  ;;  %v416_v28 = vpack.c.bf16 %v295_v26, %v294_v25  ;;  %v297_v30 = vld [vmem:[%s3728_s6 + $0x78] sm:$0xff]  ;;  %v298_v31 = vld [vmem:[%s3728_s6 + $0x80] sm:$0xff]  ;;  %v299_v32 = vld [vmem:[%s3728_s6 + $0x88] sm:$0xff] }
  0x22   : > { %v417_v33 = vpack.c.bf16 %v297_v30, %v296_v29  ;;  %v418_v34 = vpack.c.bf16 %v299_v32, %v298_v31  ;;  %v300_v35 = vld [vmem:[%s3728_s6 + $0x90] sm:$0xff]  ;;  %v301_v36 = vld [vmem:[%s3728_s6 + $0x98] sm:$0xff]  ;;  %v302_v37 = vld [vmem:[%s3728_s6 + $0xa0] sm:$0xff] }
  0x23   : > { %v303_v38 = vld [vmem:[%s3728_s6 + $0xa8] sm:$0xff]  ;;  %v419_v39 = vpack.c.bf16 %v301_v36, %v300_v35  ;;  %v304_v41 = vld [vmem:[%s3728_s6 + $0xb0] sm:$0xff]  ;;  %v305_v42 = vld [vmem:[%s3728_s6 + $0xb8] sm:$0xff] }
  0x24   : > { %v420_v40 = vpack.c.bf16 %v303_v38, %v302_v37  ;;  %v306_v43 = vld [vmem:[%s3728_s6 + $0xc0] sm:$0xff]  ;;  %v307_v44 = vld [vmem:[%s3728_s6 + $0xc8] sm:$0xff]  ;;  %v421_v45 = vpack.c.bf16 %v305_v42, %v304_v41  ;;  %v308_v47 = vld [vmem:[%s3728_s6 + $0xd0] sm:$0xff] }
  0x25   : > { %v422_v46 = vpack.c.bf16 %v307_v44, %v306_v43  ;;  %v309_v48 = vld [vmem:[%s3728_s6 + $0xd8] sm:$0xff]  ;;  %v310_v49 = vld [vmem:[%s3728_s6 + $0xe0] sm:$0xff]  ;;  %v311_v50 = vld [vmem:[%s3728_s6 + $0xe8] sm:$0xff] }
  0x26   : > { %v423_v51 = vpack.c.bf16 %v309_v48, %v308_v47  ;;  %v424_v52 = vpack.c.bf16 %v311_v50, %v310_v49  ;;  %v312_v53 = vld [vmem:[%s3728_s6 + $0xf0] sm:$0xff]  ;;  %v313_v54 = vld [vmem:[%s3728_s6 + $0xf8] sm:$0xff]  ;;  %v314_v55 = vld [vmem:[%s3728_s6 + $0x100] sm:$0xff] }
  0x27   : > { %v315_v56 = vld [vmem:[%s3728_s6 + $0x108] sm:$0xff]  ;;  %v425_v57 = vpack.c.bf16 %v313_v54, %v312_v53  ;;  %v316_v59 = vld [vmem:[%s3728_s6 + $0x110] sm:$0xff]  ;;  %v317_v60 = vld [vmem:[%s3728_s6 + $0x118] sm:$0xff] }
  0x28   : > { %3224 = vmatmul.mubr.msk.bf16.gmra.mrb[4].mxu0 %vm487_vm1, %v413_v21  ;;  %v426_v58 = vpack.c.bf16 %v315_v56, %v314_v55  ;;  %v318_v61 = vld [vmem:[%s3728_s6 + $0x120] sm:$0xff]  ;;  %v319_v62 = vld [vmem:[%s3728_s6 + $0x128] sm:$0xff]  ;;  %v427_v63 = vpack.c.bf16 %v317_v60, %v316_v59  ;;  %v320_v1 = vld [vmem:[%s3728_s6 + $0x130] sm:$0xff] }
  0x29   : > { %3227 = vmatprep.mubr.msk.bf16.mxu0 %vm487_vm1, %v414_v22  ;;  %v428_v0 = vpack.c.bf16 %v319_v62, %v318_v61  ;;  %v321_v2 = vld [vmem:[%s3728_s6 + $0x138] sm:$0xff]  ;;  %v322_v3 = vld [vmem:[%s3728_s6 + $0x140] sm:$0xff]  ;;  %v323_v4 = vld [vmem:[%s3728_s6 + $0x148] sm:$0xff] }
  0x2a   : > { %v429_v5 = vpack.c.bf16 %v321_v2, %v320_v1  ;;  %v430_v6 = vpack.c.bf16 %v323_v4, %v322_v3  ;;  %v324_v7 = vld [vmem:[%s3728_s6 + $0x150] sm:$0xff]  ;;  %v325_v8 = vld [vmem:[%s3728_s6 + $0x158] sm:$0xff]  ;;  %v326_v9 = vld [vmem:[%s3728_s6 + $0x160] sm:$0xff] }
  0x2b   : > { %v327_v10 = vld [vmem:[%s3728_s6 + $0x168] sm:$0xff]  ;;  %v431_v11 = vpack.c.bf16 %v325_v8, %v324_v7  ;;  %v328_v13 = vld [vmem:[%s3728_s6 + $0x170] sm:$0xff]  ;;  %v329_v14 = vld [vmem:[%s3728_s6 + $0x178] sm:$0xff] }
  0x2c   : > { %v432_v12 = vpack.c.bf16 %v327_v10, %v326_v9  ;;  %v330_v15 = vld [vmem:[%s3728_s6 + $0x180] sm:$0xff]  ;;  %v331_v16 = vld [vmem:[%s3728_s6 + $0x188] sm:$0xff]  ;;  %v433_v17 = vpack.c.bf16 %v329_v14, %v328_v13  ;;  %v332_v22 = vld [vmem:[%s3728_s6 + $0x190] sm:$0xff] }
  0x2d   : > { %v434_v18 = vpack.c.bf16 %v331_v16, %v330_v15  ;;  %v1421_v19 = vld [vmem:[%s4505_s3] sm:$0xff]  ;;  %v1422_v20 = vld [vmem:[%s4505_s3 + $0x8] sm:$0xff]  ;;  %v333_v23 = vld [vmem:[%s3728_s6 + $0x198] sm:$0xff] }
  0x2e   : > { %v1423_v21 = vpack.c.bf16 %v1422_v20, %v1421_v19  ;;  %v334_v24 = vld [vmem:[%s3728_s6 + $0x1a0] sm:$0xff]  ;;  %v335_v25 = vld [vmem:[%s3728_s6 + $0x1a8] sm:$0xff]  ;;  %v435_v26 = vpack.c.bf16 %v333_v23, %v332_v22  ;;  %v337_v29 = vld [vmem:[%s3728_s6 + $0x1b8] sm:$0xff] }
  0x2f   : > { %v338_v30 = vld [vmem:[%s3728_s6 + $0x1c0] sm:$0xff]  ;;  %v339_v31 = vld [vmem:[%s3728_s6 + $0x1c8] sm:$0xff]  ;;  %v341_v35 = vld [vmem:[%s3728_s6 + $0x1d8] sm:$0xff] }
  0x30   : > { %3228 = vmatmul.mubr.msk.bf16.gmra.mrb[8].mxu0 %vm487_vm1, %v415_v27  ;;  %3347 = vmatprep.subr.bf16.mxu1 %v1423_v21  ;;  %v436_v27 = vpack.c.bf16 %v335_v25, %v334_v24  ;;  %v342_v36 = vld [vmem:[%s3728_s6 + $0x1e0] sm:$0xff]  ;;  %v343_v37 = vld [vmem:[%s3728_s6 + $0x1e8] sm:$0xff]  ;;  %v345_v41 = vld [vmem:[%s3728_s6 + $0x1f8] sm:$0xff] }
  0x31   : > { %3231 = vmatprep.mubr.msk.bf16.mxu0 %vm487_vm1, %v416_v28  ;;  %3348 = vmatpush3.bf16.msra.mxu1 %v1423_v21  ;;  %v336_v28 = vld [vmem:[%s3728_s6 + $0x1b0] sm:$0xff]  ;;  %v346_v42 = vld [vmem:[%s3728_s6 + $0x200] sm:$0xff]  ;;  %v347_v43 = vld [vmem:[%s3728_s6 + $0x208] sm:$0xff] }
  0x32   : > { %v437_v32 = vpack.c.bf16 %v337_v29, %v336_v28  ;;  %v349_v47 = vld [vmem:[%s3728_s6 + $0x218] sm:$0xff]  ;;  %v350_v48 = vld [vmem:[%s3728_s6 + $0x220] sm:$0xff]  ;;  %v351_v49 = vld [vmem:[%s3728_s6 + $0x228] sm:$0xff] }
  0x33   : > { %v353_v53 = vld [vmem:[%s3728_s6 + $0x238] sm:$0xff]  ;;  %v354_v54 = vld [vmem:[%s3728_s6 + $0x240] sm:$0xff]  ;;  %v355_v55 = vld [vmem:[%s3728_s6 + $0x248] sm:$0xff] }
  0x34   : > { %v357_v59 = vld [vmem:[%s3728_s6 + $0x258] sm:$0xff]  ;;  %v358_v60 = vld [vmem:[%s3728_s6 + $0x260] sm:$0xff]  ;;  %v359_v61 = vld [vmem:[%s3728_s6 + $0x268] sm:$0xff] }
  0x35   : > { %v361_v1 = vld [vmem:[%s3728_s6 + $0x278] sm:$0xff]  ;;  %v362_v2 = vld [vmem:[%s3728_s6 + $0x280] sm:$0xff]  ;;  %v363_v3 = vld [vmem:[%s3728_s6 + $0x288] sm:$0xff] }
  0x36   : > { %v365_v7 = vld [vmem:[%s3728_s6 + $0x298] sm:$0xff]  ;;  %v366_v8 = vld [vmem:[%s3728_s6 + $0x2a0] sm:$0xff]  ;;  %v367_v9 = vld [vmem:[%s3728_s6 + $0x2a8] sm:$0xff] }
  0x37   : > { %v369_v13 = vld [vmem:[%s3728_s6 + $0x2b8] sm:$0xff]  ;;  %v370_v14 = vld [vmem:[%s3728_s6 + $0x2c0] sm:$0xff]  ;;  %v371_v15 = vld [vmem:[%s3728_s6 + $0x2c8] sm:$0xff] }
  0x38   : > { %3232 = vmatmul.mubr.msk.bf16.gmra.mrb[12].mxu0 %vm487_vm1, %v417_v33  ;;  %v438_v33 = vpack.c.bf16 %v339_v31, %v338_v30  ;;  %v373_v19 = vld [vmem:[%s3728_s6 + $0x2d8] sm:$0xff]  ;;  %v374_v20 = vld [vmem:[%s3728_s6 + $0x2e0] sm:$0xff]  ;;  %v375_v21 = vld [vmem:[%s3728_s6 + $0x2e8] sm:$0xff] }
  0x39   : > { %3235 = vmatprep.mubr.msk.bf16.mxu0 %vm487_vm1, %v418_v34  ;;  %v340_v34 = vld [vmem:[%s3728_s6 + $0x1d0] sm:$0xff]  ;;  %v456_v23 = vpack.c.bf16 %v375_v21, %v374_v20  ;;  %v377_v25 = vld [vmem:[%s3728_s6 + $0x2f8] sm:$0xff] }
  0x3a   : > { %v439_v38 = vpack.c.bf16 %v341_v35, %v340_v34  ;;  %v376_v24 = vld [vmem:[%s3728_s6 + $0x2f0] sm:$0xff]  ;;  %v381_v31 = vld [vmem:[%s3728_s6 + $0x318] sm:$0xff] }
  0x3b   : > { %v457_v28 = vpack.c.bf16 %v377_v25, %v376_v24  ;;  %v380_v30 = vld [vmem:[%s3728_s6 + $0x310] sm:$0xff]  ;;  %v401_v24 = vld [vmem:[%s3728_s6 + $0x3b8] sm:$0xff] }
  0x3c   : > { %v459_v34 = vpack.c.bf16 %v381_v31, %v380_v30 }
  0x40   : > { %3236 = vmatmul.mubr.msk.bf16.gmra.mrb[16].mxu0 %vm487_vm1, %v419_v39  ;;  %v440_v39 = vpack.c.bf16 %v343_v37, %v342_v36  ;;  %v384_v36 = vld [vmem:[%s3728_s6 + $0x330] sm:$0xff]  ;;  %v385_v37 = vld [vmem:[%s3728_s6 + $0x338] sm:$0xff] }
  0x41   : > { %3239 = vmatprep.mubr.msk.bf16.mxu0 %vm487_vm1, %v420_v40  ;;  %v344_v40 = vld [vmem:[%s3728_s6 + $0x1f0] sm:$0xff] }
  0x42   : > { %v441_v44 = vpack.c.bf16 %v345_v41, %v344_v40  ;;  %v461_v40 = vpack.c.bf16 %v385_v37, %v384_v36 }
  0x48   : > { %3240 = vmatmul.mubr.msk.bf16.gmra.mrb[20].mxu0 %vm487_vm1, %v421_v45  ;;  %v442_v45 = vpack.c.bf16 %v347_v43, %v346_v42  ;;  %v388_v42 = vld [vmem:[%s3728_s6 + $0x350] sm:$0xff]  ;;  %v389_v43 = vld [vmem:[%s3728_s6 + $0x358] sm:$0xff] }
  0x49   : > { %3243 = vmatprep.mubr.msk.bf16.mxu0 %vm487_vm1, %v422_v46  ;;  %v348_v46 = vld [vmem:[%s3728_s6 + $0x210] sm:$0xff] }
  0x4a   : > { %v443_v50 = vpack.c.bf16 %v349_v47, %v348_v46  ;;  %v463_v46 = vpack.c.bf16 %v389_v43, %v388_v42  ;;  %v404_v43 = vld [vmem:[%s3728_s6 + $0x3d0] sm:$0xff] }
  0x50   : > { %3244 = vmatmul.mubr.msk.bf16.gmra.mrb[24].mxu0 %vm487_vm1, %v423_v51  ;;  %v444_v51 = vpack.c.bf16 %v351_v49, %v350_v48  ;;  %v3903_v48 = vld [vmem:[%s4504_s2] ss:$0 sm:$0xff]  ;;  %v392_v49 = vld [vmem:[%s3728_s6 + $0x370] sm:$0xff] }
  0x51   : > { %3247 = vmatprep.mubr.msk.bf16.mxu0 %vm487_vm1, %v424_v52  ;;  %v352_v52 = vld [vmem:[%s3728_s6 + $0x230] sm:$0xff] }
  0x52   : > { %v445_v56 = vpack.c.bf16 %v353_v53, %v352_v52  ;;  %v395_v52 = vld [vmem:[%s3728_s6 + $0x388] sm:$0xff] }
  0x58   : > { %3248 = vmatmul.mubr.msk.bf16.gmra.mrb[28].mxu0 %vm487_vm1, %v425_v57  ;;  %v446_v57 = vpack.c.bf16 %v355_v55, %v354_v54 }
  0x59   : > { %3251 = vmatprep.mubr.msk.bf16.mxu0 %vm487_vm1, %v426_v58  ;;  %v356_v58 = vld [vmem:[%s3728_s6 + $0x250] sm:$0xff] }
  0x5a   : > { %v447_v62 = vpack.c.bf16 %v357_v59, %v356_v58 }
  0x60   : > { %3252 = vmatmul.mubr.msk.bf16.gmra.mrb[32].mxu0 %vm487_vm1, %v427_v63  ;;  %v448_v63 = vpack.c.bf16 %v359_v61, %v358_v60 }
  0x61   : > { %3255 = vmatprep.mubr.msk.bf16.mxu0 %vm487_vm1, %v428_v0  ;;  %v360_v0 = vld [vmem:[%s3728_s6 + $0x270] sm:$0xff] }
  0x62   : > { %v449_v4 = vpack.c.bf16 %v361_v1, %v360_v0 }
  0x68   : > { %3256 = vmatmul.mubr.msk.bf16.gmra.mrb[36].mxu0 %vm487_vm1, %v429_v5  ;;  %v450_v5 = vpack.c.bf16 %v363_v3, %v362_v2  ;;  %v396_v3 = vld [vmem:[%s3728_s6 + $0x390] sm:$0xff] }
  0x69   : > { %3259 = vmatprep.mubr.msk.bf16.mxu0 %vm487_vm1, %v430_v6  ;;  %v364_v6 = vld [vmem:[%s3728_s6 + $0x290] sm:$0xff] }
  0x6a   : > { %v451_v10 = vpack.c.bf16 %v365_v7, %v364_v6  ;;  %v398_v6 = vld [vmem:[%s3728_s6 + $0x3a0] sm:$0xff]  ;;  %v399_v7 = vld [vmem:[%s3728_s6 + $0x3a8] sm:$0xff] }
  0x70   : > { %3260 = vmatmul.mubr.msk.bf16.gmra.mrb[40].mxu0 %vm487_vm1, %v431_v11  ;;  %v452_v11 = vpack.c.bf16 %v367_v9, %v366_v8 }
  0x71   : > { %3263 = vmatprep.mubr.msk.bf16.mxu0 %vm487_vm1, %v432_v12  ;;  %v368_v12 = vld [vmem:[%s3728_s6 + $0x2b0] sm:$0xff] }
  0x72   : > { %v453_v16 = vpack.c.bf16 %v369_v13, %v368_v12 }
  0x78   : > { %3264 = vmatmul.mubr.msk.bf16.gmra.mrb[44].mxu0 %vm487_vm1, %v433_v17  ;;  %v454_v17 = vpack.c.bf16 %v371_v15, %v370_v14  ;;  %v468_v15 = vpack.c.bf16 %v399_v7, %v398_v6 }
  0x79   : > { %3267 = vmatprep.mubr.msk.bf16.mxu0 %vm487_vm1, %v434_v18  ;;  %v372_v18 = vld [vmem:[%s3728_s6 + $0x2d0] sm:$0xff] }
  0x7a   : > { %v455_v22 = vpack.c.bf16 %v373_v19, %v372_v18 }
  0x80   : > { %3268 = vmatmul.mubr.msk.bf16.gmra.mrb[48].mxu0 %vm487_vm1, %v435_v26  ;;  %v378_v26 = vld [vmem:[%s3728_s6 + $0x300] sm:$0xff] }
  0x81   : > { %3271 = vmatprep.mubr.msk.bf16.mxu0 %vm487_vm1, %v436_v27  ;;  %v379_v27 = vld [vmem:[%s3728_s6 + $0x308] sm:$0xff] }
  0x82   : > { %v458_v29 = vpack.c.bf16 %v379_v27, %v378_v26  ;;  %v402_v26 = vld [vmem:[%s3728_s6 + $0x3c0] sm:$0xff]  ;;  %v403_v27 = vld [vmem:[%s3728_s6 + $0x3c8] sm:$0xff] }
  0x88   : > { %3272 = vmatmul.mubr.msk.bf16.gmra.mrb[52].mxu0 %vm487_vm1, %v437_v32  ;;  %v382_v32 = vld [vmem:[%s3728_s6 + $0x320] sm:$0xff] }
  0x89   : > { %3275 = vmatprep.mubr.msk.bf16.mxu0 %vm487_vm1, %v438_v33  ;;  %v383_v33 = vld [vmem:[%s3728_s6 + $0x328] sm:$0xff] }
  0x8a   : > { %v460_v35 = vpack.c.bf16 %v383_v33, %v382_v32 }
  0x90   : > { %3276 = vmatmul.mubr.msk.bf16.gmra.mrb[56].mxu0 %vm487_vm1, %v439_v38  ;;  %v386_v38 = vld [vmem:[%s3728_s6 + $0x340] sm:$0xff] }
  0x91   : > { %3279 = vmatprep.mubr.msk.bf16.mxu0 %vm487_vm1, %v440_v39  ;;  %v387_v39 = vld [vmem:[%s3728_s6 + $0x348] sm:$0xff] }
  0x92   : > { %v462_v41 = vpack.c.bf16 %v387_v39, %v386_v38 }
  0x98   : > { %3280 = vmatmul.mubr.msk.bf16.gmra.mrb[60].mxu0 %vm487_vm1, %v441_v44  ;;  %v390_v44 = vld [vmem:[%s3728_s6 + $0x360] sm:$0xff] }
  0x99   : > { %3283 = vmatprep.mubr.msk.bf16.mxu0 %vm487_vm1, %v442_v45  ;;  %v391_v45 = vld [vmem:[%s3728_s6 + $0x368] sm:$0xff] }
  0x9a   : > { %v464_v47 = vpack.c.bf16 %v391_v45, %v390_v44  ;;  %v405_v44 = vld [vmem:[%s3728_s6 + $0x3d8] sm:$0xff] }
  0xa0   : > { %3284 = vmatmul.mubr.msk.bf16.gmra.mrb[64].mxu0 %vm487_vm1, %v443_v50  ;;  %v393_v50 = vld [vmem:[%s3728_s6 + $0x378] sm:$0xff] }
  0xa1   : > { %3287 = vmatprep.mubr.msk.bf16.mxu0 %vm487_vm1, %v444_v51  ;;  %v394_v51 = vld [vmem:[%s3728_s6 + $0x380] sm:$0xff] }
  0xa2   : > { %v466_v59 = vpack.c.bf16 %v395_v52, %v394_v51 }
  0xa8   : > { %3288 = vmatmul.mubr.msk.bf16.gmra.mrb[68].mxu0 %vm487_vm1, %v445_v56  ;;  %v465_v56 = vpack.c.bf16 %v393_v50, %v392_v49 }
  0xa9   : > { %3291 = vmatprep.mubr.msk.bf16.mxu0 %vm487_vm1, %v446_v57 }
  0xb0   : > { %3292 = vmatmul.mubr.msk.bf16.gmra.mrb[72].mxu0 %vm487_vm1, %v447_v62 }
  0xb1   : > { %3295 = vmatprep.mubr.msk.bf16.mxu0 %vm487_vm1, %v448_v63 }
  0xb8   : > { %3296 = vmatmul.mubr.msk.bf16.gmra.mrb[76].mxu0 %vm487_vm1, %v449_v4  ;;  %v397_v4 = vld [vmem:[%s3728_s6 + $0x398] sm:$0xff] }
  0xb9   : > { %3299 = vmatprep.mubr.msk.bf16.mxu0 %vm487_vm1, %v450_v5  ;;  %v467_v12 = vpack.c.bf16 %v397_v4, %v396_v3 }
  0xc0   : > { %3300 = vmatmul.mubr.msk.bf16.gmra.mrb[80].mxu0 %vm487_vm1, %v451_v10 }
  0xc1   : > { %3303 = vmatprep.mubr.msk.bf16.mxu0 %vm487_vm1, %v452_v11 }
  0xc8   : > { %3304 = vmatmul.mubr.msk.bf16.gmra.mrb[84].mxu0 %vm487_vm1, %v453_v16 }
  0xc9   : > { %3307 = vmatprep.mubr.msk.bf16.mxu0 %vm487_vm1, %v454_v17 }
  0xd0   : > { %3308 = vmatmul.mubr.msk.bf16.gmra.mrb[88].mxu0 %vm487_vm1, %v455_v22 }
  0xd1   : > { %3311 = vmatprep.mubr.msk.bf16.mxu0 %vm487_vm1, %v456_v23  ;;  %v400_v23 = vld [vmem:[%s3728_s6 + $0x3b0] sm:$0xff] }
  0xd2   : > { %v469_v32 = vpack.c.bf16 %v401_v24, %v400_v23 }
  0xd8   : > { %3312 = vmatmul.mubr.msk.bf16.gmra.mrb[92].mxu0 %vm487_vm1, %v457_v28 }
  0xd9   : > { %3315 = vmatprep.mubr.msk.bf16.mxu0 %vm487_vm1, %v458_v29 }
  0xe0   : > { %3316 = vmatmul.mubr.msk.bf16.gmra.mrb[96].mxu0 %vm487_vm1, %v459_v34 }
  0xe1   : > { %3319 = vmatprep.mubr.msk.bf16.mxu0 %vm487_vm1, %v460_v35  ;;  %v470_v35 = vpack.c.bf16 %v403_v27, %v402_v26 }
  0xe8   : > { %3320 = vmatmul.mubr.msk.bf16.gmra.mrb[100].mxu0 %vm487_vm1, %v461_v40 }
  0xe9   : > { %3323 = vmatprep.mubr.msk.bf16.mxu0 %vm487_vm1, %v462_v41 }
  0xf0   : > { %3324 = vmatmul.mubr.msk.bf16.gmra.mrb[104].mxu0 %vm487_vm1, %v463_v46  ;;  %v406_v46 = vld [vmem:[%s3728_s6 + $0x3e0] sm:$0xff] }
  0xf1   : > { %3327 = vmatprep.mubr.msk.bf16.mxu0 %vm487_vm1, %v464_v47  ;;  %v407_v47 = vld [vmem:[%s3728_s6 + $0x3e8] sm:$0xff] }
  0xf3   : > { %v3221_v53 = vpop.f32.mrb[0].mxu0 }
  0xf4   : > { %v727_v54 = vadd.f32 %v3221_v53, %v3903_v48  ;;  %v718_v55 = vpop.f32.mrb[1].mxu0  ;;  %v471_v53 = vpack.c.bf16 %v405_v44, %v404_v43 }
  0xf5   : > { %v719_v57 = vadd.f32 %v3903_v48, %v718_v55  ;;  %v3222_v58 = vpop.f32.mrb[2].mxu0 }
  0xf6   : > { %v730_v60 = vadd.f32 %v3222_v58, %v3903_v48  ;;  %v721_v61 = vpop.f32.mrb[3].mxu0  ;;  %v1231_v63 = vmax.f32 %v727_v54, 0.0 }
  0xf7   : > { %v722_v62 = vadd.f32 %v3903_v48, %v721_v61  ;;  %v1229_v1 = vmax.f32 %v719_v57, 0.0 }
  0xf8   : > { %v1232_v0 = vmax.f32 %v730_v60, 0.0  ;;  %3328 = vmatmul.mubr.msk.bf16.gmra.mrb[108].mxu0 %vm487_vm1, %v465_v56  ;;  %v472_v56 = vpack.c.bf16 %v407_v47, %v406_v46 }
  0xf9   : > { %v1230_v2 = vmax.f32 %v722_v62, 0.0  ;;  %3331 = vmatprep.mubr.msk.bf16.mxu0 %vm487_vm1, %v466_v59 }
  0xfa   : > { %v1358_v5 = vpack.c.bf16 %v1232_v0, %v1231_v63  ;;  %v408_v0 = vld [vmem:[%s3728_s6 + $0x3f0] sm:$0xff] }
  0xfb   : > { %v3225_v8 = vpop.f32.mrb[4].mxu0  ;;  %v1357_v9 = vpack.c.bf16 %v1230_v2, %v1229_v1  ;;  %v409_v1 = vld [vmem:[%s3728_s6 + $0x3f8] sm:$0xff]  ;;  %s272_s6 = sand.u32 1, %s3608_s27  }
  0xfc   : > { %v743_v10 = vadd.f32 %v3225_v8, %v3903_v48  ;;  %v734_v11 = vpop.f32.mrb[5].mxu0  ;;  %v473_v7 = vpack.c.bf16 %v409_v1, %v408_v0  ;;  %s2869_s9 = sshll.u32 %s272_s6, 3  ;;  %s2792_s18 = scalar_lea.sflag [#allocation4], %s272_s6 }
  0xfd   : > { %v735_v13 = vadd.f32 %v3903_v48, %v734_v11  ;;  %v3226_v14 = vpop.f32.mrb[6].mxu0  ;;  %3349 = vmatprep.mubr.msk.bf16.mxu1 %vm1431_vm2, %v1357_v9  ;;  %s274_s10 = scalar_lea.vmem [#allocation3], %s2869_s9 }
  0xfe   : > { %v746_v16 = vadd.f32 %v3226_v14, %v3903_v48  ;;  %v737_v17 = vpop.f32.mrb[7].mxu0  ;;  %3350 = vmatmul.mubr.msk.bf16.vlgmr.msra.gmra.mrb[0].mxu1 %vm1431_vm2, %v1358_v5  ;;  %v1235_v19 = vmax.f32 %v743_v10, 0.0  ;;  %s2806_s14 = sshll.u32 %s274_s10, 4  ;;  %s4462_s14 = int_to_ptr.vmem [resolvable:$true] %s2806_s14 }
  0xff   : > { %v738_v18 = vadd.f32 %v3903_v48, %v737_v17  ;;  %v1233_v21 = vmax.f32 %v735_v13, 0.0  ;;  %s3554_s19 = scalar_lea.vmem %s4462_s14, 128  ;;  %p3561_p0 = scmp.lt.s32.totalorder %s4462_s14, %s3559_s22 }
 0x100   : > { %v1236_v20 = vmax.f32 %v746_v16, 0.0  ;;  %3332 = vmatmul.mubr.msk.bf16.gmra.mrb[112].mxu0 %vm487_vm1, %v467_v12  ;;  %p3555_p11 = scmp.ne.s32.totalorder %s4462_s14, %s3554_s19  ;;  %p3562_p1 = scmp.lt.s32.totalorder %s3560_s23, %s3554_s19 }
 0x101   : > { %v1234_v22 = vmax.f32 %v738_v18, 0.0  ;;  %3335 = vmatprep.mubr.msk.bf16.mxu0 %vm487_vm1, %v468_v15 }
 0x102   : > { %v1360_v25 = vpack.c.bf16 %v1236_v20, %v1235_v19  ;;  %p3556_p12 = pnand %p3555_p11, %p3699_p5  ;;  %p3563_p2 = por %p3562_p1, %p3561_p0 }
 0x103   : > { %v1359_v28 = vpack.c.bf16 %v1234_v22, %v1233_v21  ;;  %v3229_v29 = vpop.f32.mrb[8].mxu0 }
 0x104   : > { %v759_v30 = vadd.f32 %v3229_v29, %v3903_v48  ;;  %v750_v31 = vpop.f32.mrb[9].mxu0  ;;  %p3557_p13 = pneg %p3556_p12 }
 0x105   : > { %v751_v33 = vadd.f32 %v3903_v48, %v750_v31  ;;  %v3230_v34 = vpop.f32.mrb[10].mxu0  ;;  %3353 = vmatprep.mubr.msk.bf16.mxu1 %vm1431_vm2, %v1359_v28 }
 0x106   : > { %v762_v36 = vadd.f32 %v3230_v34, %v3903_v48  ;;  %v753_v37 = vpop.f32.mrb[11].mxu0  ;;  %3354 = vmatmul.mubr.msk.bf16.gmra.mrb[4].mxu1 %vm1431_vm2, %v1360_v25  ;;  %v1239_v39 = vmax.f32 %v759_v30, 0.0  ;;  %p3564_p3 = pnand %p3563_p2, %p3557_p13 }
 0x107   : > { %v754_v38 = vadd.f32 %v3903_v48, %v753_v37  ;;  %v1237_v41 = vmax.f32 %v751_v33, 0.0 }
 0x108   : > { %v1240_v40 = vmax.f32 %v762_v36, 0.0  ;;  %3336 = vmatmul.mubr.msk.bf16.gmra.mrb[116].mxu0 %vm487_vm1, %v469_v32 }
 0x109   : > { %v1238_v42 = vmax.f32 %v754_v38, 0.0  ;;  %3339 = vmatprep.mubr.msk.bf16.mxu0 %vm487_vm1, %v470_v35 }
 0x10a   : > { %v1362_v45 = vpack.c.bf16 %v1240_v40, %v1239_v39 }
 0x10b   : > { %v1361_v49 = vpack.c.bf16 %v1238_v42, %v1237_v41  ;;  %v3233_v50 = vpop.f32.mrb[12].mxu0 }
 0x10c   : > { %v775_v51 = vadd.f32 %v3233_v50, %v3903_v48  ;;  %v766_v52 = vpop.f32.mrb[13].mxu0 }
 0x10d   : > { %v767_v54 = vadd.f32 %v3903_v48, %v766_v52  ;;  %v3234_v55 = vpop.f32.mrb[14].mxu0  ;;  %3357 = vmatprep.mubr.msk.bf16.mxu1 %vm1431_vm2, %v1361_v49 }
 0x10e   : > { %v778_v57 = vadd.f32 %v3234_v55, %v3903_v48  ;;  %v769_v58 = vpop.f32.mrb[15].mxu0  ;;  %3358 = vmatmul.mubr.msk.bf16.gmra.mrb[8].mxu1 %vm1431_vm2, %v1362_v45  ;;  %v1243_v60 = vmax.f32 %v775_v51, 0.0 }
 0x10f   : > { %v770_v59 = vadd.f32 %v3903_v48, %v769_v58  ;;  %v1241_v62 = vmax.f32 %v767_v54, 0.0 }
 0x110   : > { %v1244_v61 = vmax.f32 %v778_v57, 0.0  ;;  %3340 = vmatmul.mubr.msk.bf16.gmra.mrb[120].mxu0 %vm487_vm1, %v471_v53 }
 0x111   : > { %v1242_v63 = vmax.f32 %v770_v59, 0.0  ;;  %3343 = vmatprep.mubr.msk.bf16.mxu0 %vm487_vm1, %v472_v56 }
 0x112   : > { %v1364_v2 = vpack.c.bf16 %v1244_v61, %v1243_v60 }
 0x113   : > { %v1363_v3 = vpack.c.bf16 %v1242_v63, %v1241_v62  ;;  %v3237_v4 = vpop.f32.mrb[16].mxu0 }
 0x114   : > { %v791_v5 = vadd.f32 %v3237_v4, %v3903_v48  ;;  %v782_v6 = vpop.f32.mrb[17].mxu0 }
 0x115   : > { %v783_v8 = vadd.f32 %v3903_v48, %v782_v6  ;;  %v3238_v9 = vpop.f32.mrb[18].mxu0  ;;  %3361 = vmatprep.mubr.msk.bf16.mxu1 %vm1431_vm2, %v1363_v3 }
 0x116   : > { %v794_v10 = vadd.f32 %v3238_v9, %v3903_v48  ;;  %v785_v11 = vpop.f32.mrb[19].mxu0  ;;  %3362 = vmatmul.mubr.msk.bf16.gmra.mrb[12].mxu1 %vm1431_vm2, %v1364_v2  ;;  %v1247_v13 = vmax.f32 %v791_v5, 0.0 }
 0x117   : > { %v786_v12 = vadd.f32 %v3903_v48, %v785_v11  ;;  %v1245_v15 = vmax.f32 %v783_v8, 0.0 }
 0x118   : > { %v1248_v14 = vmax.f32 %v794_v10, 0.0  ;;  %3344 = vmatmul.mubr.msk.bf16.gmra.mrb[124].mxu0 %vm487_vm1, %v473_v7 }
 0x119   : > { %v1246_v16 = vmax.f32 %v786_v12, 0.0 }
 0x11a   : > { %v1366_v17 = vpack.c.bf16 %v1248_v14, %v1247_v13 }
 0x11b   : > { %v1365_v18 = vpack.c.bf16 %v1246_v16, %v1245_v15  ;;  %v3241_v19 = vpop.f32.mrb[20].mxu0 }
 0x11c   : > { %v807_v20 = vadd.f32 %v3241_v19, %v3903_v48  ;;  %v798_v21 = vpop.f32.mrb[21].mxu0 }
 0x11d   : > { %v799_v22 = vadd.f32 %v3903_v48, %v798_v21  ;;  %v3242_v23 = vpop.f32.mrb[22].mxu0  ;;  %3365 = vmatprep.mubr.msk.bf16.mxu1 %vm1431_vm2, %v1365_v18 }
 0x11e   : > { %v810_v24 = vadd.f32 %v3242_v23, %v3903_v48  ;;  %v801_v25 = vpop.f32.mrb[23].mxu0  ;;  %3366 = vmatmul.mubr.msk.bf16.gmra.mrb[16].mxu1 %vm1431_vm2, %v1366_v17  ;;  %v1251_v27 = vmax.f32 %v807_v20, 0.0 }
 0x11f   : > { %v802_v26 = vadd.f32 %v3903_v48, %v801_v25  ;;  %v1249_v29 = vmax.f32 %v799_v22, 0.0 }
 0x120   : > { %v1252_v28 = vmax.f32 %v810_v24, 0.0 }
 0x121   : > { %v1250_v30 = vmax.f32 %v802_v26, 0.0 }
 0x122   : > { %v1368_v31 = vpack.c.bf16 %v1252_v28, %v1251_v27 }
 0x123   : > { %v1367_v32 = vpack.c.bf16 %v1250_v30, %v1249_v29  ;;  %v3245_v33 = vpop.f32.mrb[24].mxu0 }
 0x124   : > { %v823_v34 = vadd.f32 %v3245_v33, %v3903_v48  ;;  %v814_v35 = vpop.f32.mrb[25].mxu0 }
 0x125   : > { %v815_v36 = vadd.f32 %v3903_v48, %v814_v35  ;;  %v3246_v37 = vpop.f32.mrb[26].mxu0  ;;  %3369 = vmatprep.mubr.msk.bf16.mxu1 %vm1431_vm2, %v1367_v32 }
 0x126   : > { %v826_v38 = vadd.f32 %v3246_v37, %v3903_v48  ;;  %v817_v39 = vpop.f32.mrb[27].mxu0  ;;  %3370 = vmatmul.mubr.msk.bf16.gmra.mrb[20].mxu1 %vm1431_vm2, %v1368_v31  ;;  %v1255_v41 = vmax.f32 %v823_v34, 0.0 }
 0x127   : > { %v818_v40 = vadd.f32 %v3903_v48, %v817_v39  ;;  %v1253_v43 = vmax.f32 %v815_v36, 0.0 }
 0x128   : > { %v1256_v42 = vmax.f32 %v826_v38, 0.0 }
 0x129   : > { %v1254_v44 = vmax.f32 %v818_v40, 0.0 }
 0x12a   : > { %v1370_v45 = vpack.c.bf16 %v1256_v42, %v1255_v41 }
 0x12b   : > { %v1369_v46 = vpack.c.bf16 %v1254_v44, %v1253_v43  ;;  %v3249_v47 = vpop.f32.mrb[28].mxu0 }
 0x12c   : > { %v839_v49 = vadd.f32 %v3249_v47, %v3903_v48  ;;  %v830_v50 = vpop.f32.mrb[29].mxu0 }
 0x12d   : > { %v831_v51 = vadd.f32 %v3903_v48, %v830_v50  ;;  %v3250_v52 = vpop.f32.mrb[30].mxu0  ;;  %3373 = vmatprep.mubr.msk.bf16.mxu1 %vm1431_vm2, %v1369_v46 }
 0x12e   : > { %v842_v53 = vadd.f32 %v3250_v52, %v3903_v48  ;;  %v833_v54 = vpop.f32.mrb[31].mxu0  ;;  %3374 = vmatmul.mubr.msk.bf16.gmra.mrb[24].mxu1 %vm1431_vm2, %v1370_v45  ;;  %v1259_v56 = vmax.f32 %v839_v49, 0.0 }
 0x12f   : > { %v834_v55 = vadd.f32 %v3903_v48, %v833_v54  ;;  %v1257_v58 = vmax.f32 %v831_v51, 0.0 }
 0x130   : > { %v1260_v57 = vmax.f32 %v842_v53, 0.0 }
 0x131   : > { %v1258_v59 = vmax.f32 %v834_v55, 0.0 }
 0x132   : > { %v1372_v60 = vpack.c.bf16 %v1260_v57, %v1259_v56 }
 0x133   : > { %v1371_v61 = vpack.c.bf16 %v1258_v59, %v1257_v58  ;;  %v3253_v62 = vpop.f32.mrb[32].mxu0 }
 0x134   : > { %v855_v63 = vadd.f32 %v3253_v62, %v3903_v48  ;;  %v846_v0 = vpop.f32.mrb[33].mxu0 }
 0x135   : > { %v847_v1 = vadd.f32 %v3903_v48, %v846_v0  ;;  %v3254_v2 = vpop.f32.mrb[34].mxu0  ;;  %3377 = vmatprep.mubr.msk.bf16.mxu1 %vm1431_vm2, %v1371_v61 }
 0x136   : > { %v858_v3 = vadd.f32 %v3254_v2, %v3903_v48  ;;  %v849_v4 = vpop.f32.mrb[35].mxu0  ;;  %3378 = vmatmul.mubr.msk.bf16.gmra.mrb[28].mxu1 %vm1431_vm2, %v1372_v60  ;;  %v1263_v6 = vmax.f32 %v855_v63, 0.0 }
 0x137   : > { %v850_v5 = vadd.f32 %v3903_v48, %v849_v4  ;;  %v1261_v8 = vmax.f32 %v847_v1, 0.0 }
 0x138   : > { %v1264_v7 = vmax.f32 %v858_v3, 0.0 }
 0x139   : > { %v1262_v9 = vmax.f32 %v850_v5, 0.0 }
 0x13a   : > { %v1374_v10 = vpack.c.bf16 %v1264_v7, %v1263_v6 }
 0x13b   : > { %v1373_v11 = vpack.c.bf16 %v1262_v9, %v1261_v8  ;;  %v3257_v12 = vpop.f32.mrb[36].mxu0 }
 0x13c   : > { %v871_v13 = vadd.f32 %v3257_v12, %v3903_v48  ;;  %v862_v14 = vpop.f32.mrb[37].mxu0 }
 0x13d   : > { %v863_v15 = vadd.f32 %v3903_v48, %v862_v14  ;;  %v3258_v16 = vpop.f32.mrb[38].mxu0  ;;  %3381 = vmatprep.mubr.msk.bf16.mxu1 %vm1431_vm2, %v1373_v11 }
 0x13e   : > { %v874_v17 = vadd.f32 %v3258_v16, %v3903_v48  ;;  %v865_v18 = vpop.f32.mrb[39].mxu0  ;;  %3382 = vmatmul.mubr.msk.bf16.gmra.mrb[32].mxu1 %vm1431_vm2, %v1374_v10  ;;  %v1267_v20 = vmax.f32 %v871_v13, 0.0 }
 0x13f   : > { %v866_v19 = vadd.f32 %v3903_v48, %v865_v18  ;;  %v1265_v22 = vmax.f32 %v863_v15, 0.0 }
 0x140   : > { %v1268_v21 = vmax.f32 %v874_v17, 0.0 }
 0x141   : > { %v1266_v23 = vmax.f32 %v866_v19, 0.0 }
 0x142   : > { %v1376_v24 = vpack.c.bf16 %v1268_v21, %v1267_v20 }
 0x143   : > { %v1375_v25 = vpack.c.bf16 %v1266_v23, %v1265_v22  ;;  %v3261_v26 = vpop.f32.mrb[40].mxu0 }
 0x144   : > { %v887_v27 = vadd.f32 %v3261_v26, %v3903_v48  ;;  %v878_v28 = vpop.f32.mrb[41].mxu0 }
 0x145   : > { %v879_v29 = vadd.f32 %v3903_v48, %v878_v28  ;;  %v3262_v30 = vpop.f32.mrb[42].mxu0  ;;  %3385 = vmatprep.mubr.msk.bf16.mxu1 %vm1431_vm2, %v1375_v25 }
 0x146   : > { %v890_v31 = vadd.f32 %v3262_v30, %v3903_v48  ;;  %v881_v32 = vpop.f32.mrb[43].mxu0  ;;  %3386 = vmatmul.mubr.msk.bf16.gmra.mrb[36].mxu1 %vm1431_vm2, %v1376_v24  ;;  %v1271_v34 = vmax.f32 %v887_v27, 0.0 }
 0x147   : > { %v882_v33 = vadd.f32 %v3903_v48, %v881_v32  ;;  %v1269_v36 = vmax.f32 %v879_v29, 0.0 }
 0x148   : > { %v1272_v35 = vmax.f32 %v890_v31, 0.0 }
 0x149   : > { %v1270_v37 = vmax.f32 %v882_v33, 0.0 }
 0x14a   : > { %v1378_v38 = vpack.c.bf16 %v1272_v35, %v1271_v34 }
 0x14b   : > { %v1377_v39 = vpack.c.bf16 %v1270_v37, %v1269_v36  ;;  %v3265_v40 = vpop.f32.mrb[44].mxu0 }
 0x14c   : > { %v903_v41 = vadd.f32 %v3265_v40, %v3903_v48  ;;  %v894_v42 = vpop.f32.mrb[45].mxu0 }
 0x14d   : > { %v895_v43 = vadd.f32 %v3903_v48, %v894_v42  ;;  %v3266_v44 = vpop.f32.mrb[46].mxu0  ;;  %3389 = vmatprep.mubr.msk.bf16.mxu1 %vm1431_vm2, %v1377_v39 }
 0x14e   : > { %v906_v45 = vadd.f32 %v3266_v44, %v3903_v48  ;;  %v897_v46 = vpop.f32.mrb[47].mxu0  ;;  %3390 = vmatmul.mubr.msk.bf16.gmra.mrb[40].mxu1 %vm1431_vm2, %v1378_v38  ;;  %v1275_v49 = vmax.f32 %v903_v41, 0.0 }
 0x14f   : > { %v898_v47 = vadd.f32 %v3903_v48, %v897_v46  ;;  %v1273_v51 = vmax.f32 %v895_v43, 0.0 }
 0x150   : > { %v1276_v50 = vmax.f32 %v906_v45, 0.0 }
 0x151   : > { %v1274_v52 = vmax.f32 %v898_v47, 0.0 }
 0x152   : > { %v1380_v53 = vpack.c.bf16 %v1276_v50, %v1275_v49 }
 0x153   : > { %v1379_v54 = vpack.c.bf16 %v1274_v52, %v1273_v51  ;;  %v3269_v55 = vpop.f32.mrb[48].mxu0 }
 0x154   : > { %v919_v56 = vadd.f32 %v3269_v55, %v3903_v48  ;;  %v910_v57 = vpop.f32.mrb[49].mxu0 }
 0x155   : > { %v911_v58 = vadd.f32 %v3903_v48, %v910_v57  ;;  %v3270_v59 = vpop.f32.mrb[50].mxu0  ;;  %3393 = vmatprep.mubr.msk.bf16.mxu1 %vm1431_vm2, %v1379_v54 }
 0x156   : > { %v922_v60 = vadd.f32 %v3270_v59, %v3903_v48  ;;  %v913_v61 = vpop.f32.mrb[51].mxu0  ;;  %3394 = vmatmul.mubr.msk.bf16.gmra.mrb[44].mxu1 %vm1431_vm2, %v1380_v53  ;;  %v1279_v63 = vmax.f32 %v919_v56, 0.0 }
 0x157   : > { %v914_v62 = vadd.f32 %v3903_v48, %v913_v61  ;;  %v1277_v1 = vmax.f32 %v911_v58, 0.0 }
 0x158   : > { %v1280_v0 = vmax.f32 %v922_v60, 0.0 }
 0x159   : > { %v1278_v2 = vmax.f32 %v914_v62, 0.0 }
 0x15a   : > { %v1382_v3 = vpack.c.bf16 %v1280_v0, %v1279_v63 }
 0x15b   : > { %v1381_v4 = vpack.c.bf16 %v1278_v2, %v1277_v1  ;;  %v3273_v5 = vpop.f32.mrb[52].mxu0 }
 0x15c   : > { %v935_v6 = vadd.f32 %v3273_v5, %v3903_v48  ;;  %v926_v7 = vpop.f32.mrb[53].mxu0 }
 0x15d   : > { %3397 = vmatprep.mubr.msk.bf16.mxu1 %vm1431_vm2, %v1381_v4  ;;  %v927_v8 = vadd.f32 %v3903_v48, %v926_v7  ;;  %v3274_v9 = vpop.f32.mrb[54].mxu0 }
 0x15e   : > { %3398 = vmatmul.mubr.msk.bf16.gmra.mrb[48].mxu1 %vm1431_vm2, %v1382_v3  ;;  %v938_v10 = vadd.f32 %v3274_v9, %v3903_v48  ;;  %v929_v11 = vpop.f32.mrb[55].mxu0  ;;  %v1283_v13 = vmax.f32 %v935_v6, 0.0 }
 0x15f   : > { %v930_v12 = vadd.f32 %v3903_v48, %v929_v11  ;;  %v1281_v15 = vmax.f32 %v927_v8, 0.0 }
 0x160   : > { %v1284_v14 = vmax.f32 %v938_v10, 0.0 }
 0x161   : > { %v1282_v16 = vmax.f32 %v930_v12, 0.0 }
 0x162   : > { %v1384_v17 = vpack.c.bf16 %v1284_v14, %v1283_v13 }
 0x163   : > { %v1383_v18 = vpack.c.bf16 %v1282_v16, %v1281_v15  ;;  %v3277_v19 = vpop.f32.mrb[56].mxu0 }
 0x164   : > { %v951_v20 = vadd.f32 %v3277_v19, %v3903_v48  ;;  %v942_v21 = vpop.f32.mrb[57].mxu0 }
 0x165   : > { %3401 = vmatprep.mubr.msk.bf16.mxu1 %vm1431_vm2, %v1383_v18  ;;  %v943_v22 = vadd.f32 %v3903_v48, %v942_v21  ;;  %v3278_v23 = vpop.f32.mrb[58].mxu0 }
 0x166   : > { %3402 = vmatmul.mubr.msk.bf16.gmra.mrb[52].mxu1 %vm1431_vm2, %v1384_v17  ;;  %v954_v24 = vadd.f32 %v3278_v23, %v3903_v48  ;;  %v945_v25 = vpop.f32.mrb[59].mxu0  ;;  %v1287_v27 = vmax.f32 %v951_v20, 0.0 }
 0x167   : > { %v946_v26 = vadd.f32 %v3903_v48, %v945_v25  ;;  %v1285_v29 = vmax.f32 %v943_v22, 0.0 }
 0x168   : > { %v1288_v28 = vmax.f32 %v954_v24, 0.0 }
 0x169   : > { %v1286_v30 = vmax.f32 %v946_v26, 0.0 }
 0x16a   : > { %v1386_v31 = vpack.c.bf16 %v1288_v28, %v1287_v27 }
 0x16b   : > { %v1385_v32 = vpack.c.bf16 %v1286_v30, %v1285_v29  ;;  %v3281_v33 = vpop.f32.mrb[60].mxu0 }
 0x16c   : > { %v967_v34 = vadd.f32 %v3281_v33, %v3903_v48  ;;  %v958_v35 = vpop.f32.mrb[61].mxu0 }
 0x16d   : > { %3405 = vmatprep.mubr.msk.bf16.mxu1 %vm1431_vm2, %v1385_v32  ;;  %v959_v36 = vadd.f32 %v3903_v48, %v958_v35  ;;  %v3282_v37 = vpop.f32.mrb[62].mxu0 }
 0x16e   : > { %3406 = vmatmul.mubr.msk.bf16.gmra.mrb[56].mxu1 %vm1431_vm2, %v1386_v31  ;;  %v970_v38 = vadd.f32 %v3282_v37, %v3903_v48  ;;  %v961_v39 = vpop.f32.mrb[63].mxu0  ;;  %v1291_v41 = vmax.f32 %v967_v34, 0.0 }
 0x16f   : > { %v962_v40 = vadd.f32 %v3903_v48, %v961_v39  ;;  %v1289_v43 = vmax.f32 %v959_v36, 0.0 }
 0x170   : > { %v1292_v42 = vmax.f32 %v970_v38, 0.0 }
 0x171   : > { %v1290_v44 = vmax.f32 %v962_v40, 0.0 }
 0x172   : > { %v1388_v45 = vpack.c.bf16 %v1292_v42, %v1291_v41 }
 0x173   : > { %v1387_v46 = vpack.c.bf16 %v1290_v44, %v1289_v43  ;;  %v3285_v47 = vpop.f32.mrb[64].mxu0 }
 0x174   : > { %v983_v49 = vadd.f32 %v3285_v47, %v3903_v48  ;;  %v974_v50 = vpop.f32.mrb[65].mxu0 }
 0x175   : > { %3409 = vmatprep.mubr.msk.bf16.mxu1 %vm1431_vm2, %v1387_v46  ;;  %v975_v51 = vadd.f32 %v3903_v48, %v974_v50  ;;  %v3286_v52 = vpop.f32.mrb[66].mxu0 }
 0x176   : > { %3410 = vmatmul.mubr.msk.bf16.gmra.mrb[60].mxu1 %vm1431_vm2, %v1388_v45  ;;  %v986_v53 = vadd.f32 %v3286_v52, %v3903_v48  ;;  %v977_v54 = vpop.f32.mrb[67].mxu0  ;;  %v1295_v56 = vmax.f32 %v983_v49, 0.0 }
 0x177   : > { %v978_v55 = vadd.f32 %v3903_v48, %v977_v54  ;;  %v1293_v58 = vmax.f32 %v975_v51, 0.0 }
 0x178   : > { %v1296_v57 = vmax.f32 %v986_v53, 0.0 }
 0x179   : > { %v1294_v59 = vmax.f32 %v978_v55, 0.0 }
 0x17a   : > { %v1390_v60 = vpack.c.bf16 %v1296_v57, %v1295_v56 }
 0x17b   : > { %v1389_v61 = vpack.c.bf16 %v1294_v59, %v1293_v58  ;;  %v3289_v62 = vpop.f32.mrb[68].mxu0 }
 0x17c   : > { %v999_v63 = vadd.f32 %v3289_v62, %v3903_v48  ;;  %v990_v0 = vpop.f32.mrb[69].mxu0 }
 0x17d   : > { %v991_v1 = vadd.f32 %v3903_v48, %v990_v0  ;;  %v3290_v2 = vpop.f32.mrb[70].mxu0  ;;  %3413 = vmatprep.mubr.msk.bf16.mxu1 %vm1431_vm2, %v1389_v61 }
 0x17e   : > { %v1002_v3 = vadd.f32 %v3290_v2, %v3903_v48  ;;  %v993_v4 = vpop.f32.mrb[71].mxu0  ;;  %3414 = vmatmul.mubr.msk.bf16.gmra.mrb[64].mxu1 %vm1431_vm2, %v1390_v60  ;;  %v1299_v6 = vmax.f32 %v999_v63, 0.0 }
 0x17f   : > { %v994_v5 = vadd.f32 %v3903_v48, %v993_v4  ;;  %v1297_v8 = vmax.f32 %v991_v1, 0.0 }
 0x180   : > { %v1300_v7 = vmax.f32 %v1002_v3, 0.0 }
 0x181   : > { %v1298_v9 = vmax.f32 %v994_v5, 0.0 }
 0x182   : > { %v1392_v10 = vpack.c.bf16 %v1300_v7, %v1299_v6 }
 0x183   : > { %v1391_v11 = vpack.c.bf16 %v1298_v9, %v1297_v8  ;;  %v3293_v12 = vpop.f32.mrb[72].mxu0 }
 0x184   : > { %v1015_v13 = vadd.f32 %v3293_v12, %v3903_v48  ;;  %v1006_v14 = vpop.f32.mrb[73].mxu0 }
 0x185   : > { %v1007_v15 = vadd.f32 %v3903_v48, %v1006_v14  ;;  %v3294_v16 = vpop.f32.mrb[74].mxu0  ;;  %3417 = vmatprep.mubr.msk.bf16.mxu1 %vm1431_vm2, %v1391_v11 }
 0x186   : > { %v1018_v17 = vadd.f32 %v3294_v16, %v3903_v48  ;;  %v1009_v18 = vpop.f32.mrb[75].mxu0  ;;  %3418 = vmatmul.mubr.msk.bf16.gmra.mrb[68].mxu1 %vm1431_vm2, %v1392_v10  ;;  %v1303_v20 = vmax.f32 %v1015_v13, 0.0 }
 0x187   : > { %v1010_v19 = vadd.f32 %v3903_v48, %v1009_v18  ;;  %v1301_v22 = vmax.f32 %v1007_v15, 0.0 }
 0x188   : > { %v1304_v21 = vmax.f32 %v1018_v17, 0.0 }
 0x189   : > { %v1302_v23 = vmax.f32 %v1010_v19, 0.0 }
 0x18a   : > { %v1394_v24 = vpack.c.bf16 %v1304_v21, %v1303_v20 }
 0x18b   : > { %v1393_v25 = vpack.c.bf16 %v1302_v23, %v1301_v22  ;;  %v3297_v26 = vpop.f32.mrb[76].mxu0 }
 0x18c   : > { %v1031_v27 = vadd.f32 %v3297_v26, %v3903_v48  ;;  %v1022_v28 = vpop.f32.mrb[77].mxu0 }
 0x18d   : > { %v1023_v29 = vadd.f32 %v3903_v48, %v1022_v28  ;;  %v3298_v30 = vpop.f32.mrb[78].mxu0  ;;  %3421 = vmatprep.mubr.msk.bf16.mxu1 %vm1431_vm2, %v1393_v25 }
 0x18e   : > { %v1034_v31 = vadd.f32 %v3298_v30, %v3903_v48  ;;  %v1025_v32 = vpop.f32.mrb[79].mxu0  ;;  %3422 = vmatmul.mubr.msk.bf16.gmra.mrb[72].mxu1 %vm1431_vm2, %v1394_v24  ;;  %v1307_v34 = vmax.f32 %v1031_v27, 0.0 }
 0x18f   : > { %v1026_v33 = vadd.f32 %v3903_v48, %v1025_v32  ;;  %v1305_v36 = vmax.f32 %v1023_v29, 0.0 }
 0x190   : > { %v1308_v35 = vmax.f32 %v1034_v31, 0.0 }
 0x191   : > { %v1306_v37 = vmax.f32 %v1026_v33, 0.0 }
 0x192   : > { %v1396_v38 = vpack.c.bf16 %v1308_v35, %v1307_v34 }
 0x193   : > { %v1395_v39 = vpack.c.bf16 %v1306_v37, %v1305_v36  ;;  %v3301_v40 = vpop.f32.mrb[80].mxu0 }
 0x194   : > { %v1047_v41 = vadd.f32 %v3301_v40, %v3903_v48  ;;  %v1038_v42 = vpop.f32.mrb[81].mxu0 }
 0x195   : > { %v1039_v43 = vadd.f32 %v3903_v48, %v1038_v42  ;;  %v3302_v44 = vpop.f32.mrb[82].mxu0  ;;  %3425 = vmatprep.mubr.msk.bf16.mxu1 %vm1431_vm2, %v1395_v39 }
 0x196   : > { %v1050_v45 = vadd.f32 %v3302_v44, %v3903_v48  ;;  %v1041_v46 = vpop.f32.mrb[83].mxu0  ;;  %3426 = vmatmul.mubr.msk.bf16.gmra.mrb[76].mxu1 %vm1431_vm2, %v1396_v38  ;;  %v1311_v49 = vmax.f32 %v1047_v41, 0.0 }
 0x197   : > { %v1042_v47 = vadd.f32 %v3903_v48, %v1041_v46  ;;  %v1309_v51 = vmax.f32 %v1039_v43, 0.0 }
 0x198   : > { %v1312_v50 = vmax.f32 %v1050_v45, 0.0 }
 0x199   : > { %v1310_v52 = vmax.f32 %v1042_v47, 0.0 }
 0x19a   : > { %v1398_v53 = vpack.c.bf16 %v1312_v50, %v1311_v49 }
 0x19b   : > { %v1397_v54 = vpack.c.bf16 %v1310_v52, %v1309_v51  ;;  %v3305_v55 = vpop.f32.mrb[84].mxu0 }
 0x19c   : > { %v1063_v56 = vadd.f32 %v3305_v55, %v3903_v48  ;;  %v1054_v57 = vpop.f32.mrb[85].mxu0 }
 0x19d   : > { %v1055_v58 = vadd.f32 %v3903_v48, %v1054_v57  ;;  %v3306_v59 = vpop.f32.mrb[86].mxu0  ;;  %3429 = vmatprep.mubr.msk.bf16.mxu1 %vm1431_vm2, %v1397_v54 }
 0x19e   : > { %v1066_v60 = vadd.f32 %v3306_v59, %v3903_v48  ;;  %v1057_v61 = vpop.f32.mrb[87].mxu0  ;;  %3430 = vmatmul.mubr.msk.bf16.gmra.mrb[80].mxu1 %vm1431_vm2, %v1398_v53  ;;  %v1315_v63 = vmax.f32 %v1063_v56, 0.0 }
 0x19f   : > { %v1058_v62 = vadd.f32 %v3903_v48, %v1057_v61  ;;  %v1313_v1 = vmax.f32 %v1055_v58, 0.0 }
 0x1a0   : > { %v1316_v0 = vmax.f32 %v1066_v60, 0.0 }
 0x1a1   : > { %v1314_v2 = vmax.f32 %v1058_v62, 0.0 }
 0x1a2   : > { %v1400_v3 = vpack.c.bf16 %v1316_v0, %v1315_v63 }
 0x1a3   : > { %v1399_v4 = vpack.c.bf16 %v1314_v2, %v1313_v1  ;;  %v3309_v5 = vpop.f32.mrb[88].mxu0 }
 0x1a4   : > { %v1079_v6 = vadd.f32 %v3309_v5, %v3903_v48  ;;  %v1070_v7 = vpop.f32.mrb[89].mxu0 }
 0x1a5   : > { %v1071_v8 = vadd.f32 %v3903_v48, %v1070_v7  ;;  %v3310_v9 = vpop.f32.mrb[90].mxu0  ;;  %3433 = vmatprep.mubr.msk.bf16.mxu1 %vm1431_vm2, %v1399_v4 }
 0x1a6   : > { %v1082_v10 = vadd.f32 %v3310_v9, %v3903_v48  ;;  %v1073_v11 = vpop.f32.mrb[91].mxu0  ;;  %3434 = vmatmul.mubr.msk.bf16.gmra.mrb[84].mxu1 %vm1431_vm2, %v1400_v3  ;;  %v1319_v13 = vmax.f32 %v1079_v6, 0.0 }
 0x1a7   : > { %v1074_v12 = vadd.f32 %v3903_v48, %v1073_v11  ;;  %v1317_v15 = vmax.f32 %v1071_v8, 0.0 }
 0x1a8   : > { %v1320_v14 = vmax.f32 %v1082_v10, 0.0 }
 0x1a9   : > { %v1318_v16 = vmax.f32 %v1074_v12, 0.0 }
 0x1aa   : > { %v1402_v17 = vpack.c.bf16 %v1320_v14, %v1319_v13 }
 0x1ab   : > { %v1401_v18 = vpack.c.bf16 %v1318_v16, %v1317_v15  ;;  %v3313_v19 = vpop.f32.mrb[92].mxu0 }
 0x1ac   : > { %v1095_v20 = vadd.f32 %v3313_v19, %v3903_v48  ;;  %v1086_v21 = vpop.f32.mrb[93].mxu0  ;;  %v4101_v19 = vld [vmem:[%s4506_s4] ss:$0 sm:$0xff] }
 0x1ad   : > { %v1087_v22 = vadd.f32 %v3903_v48, %v1086_v21  ;;  %v3314_v23 = vpop.f32.mrb[94].mxu0  ;;  %3437 = vmatprep.mubr.msk.bf16.mxu1 %vm1431_vm2, %v1401_v18 }
 0x1ae   : > { %v1098_v24 = vadd.f32 %v3314_v23, %v3903_v48  ;;  %v1089_v25 = vpop.f32.mrb[95].mxu0  ;;  %3438 = vmatmul.mubr.msk.bf16.gmra.mrb[88].mxu1 %vm1431_vm2, %v1402_v17  ;;  %v1323_v27 = vmax.f32 %v1095_v20, 0.0 }
 0x1af   : > { %v1090_v26 = vadd.f32 %v3903_v48, %v1089_v25  ;;  %v1321_v29 = vmax.f32 %v1087_v22, 0.0 }
 0x1b0   : > { %v1324_v28 = vmax.f32 %v1098_v24, 0.0 }
 0x1b1   : > { %v1322_v30 = vmax.f32 %v1090_v26, 0.0 }
 0x1b2   : > { %v1404_v31 = vpack.c.bf16 %v1324_v28, %v1323_v27 }
 0x1b3   : > { %v1403_v32 = vpack.c.bf16 %v1322_v30, %v1321_v29  ;;  %v3317_v33 = vpop.f32.mrb[96].mxu0 }
 0x1b4   : > { %v1111_v34 = vadd.f32 %v3317_v33, %v3903_v48  ;;  %v1102_v35 = vpop.f32.mrb[97].mxu0 }
 0x1b5   : > { %v1103_v36 = vadd.f32 %v3903_v48, %v1102_v35  ;;  %v3318_v37 = vpop.f32.mrb[98].mxu0  ;;  %3441 = vmatprep.mubr.msk.bf16.mxu1 %vm1431_vm2, %v1403_v32 }
 0x1b6   : > { %v1114_v38 = vadd.f32 %v3318_v37, %v3903_v48  ;;  %v1105_v39 = vpop.f32.mrb[99].mxu0  ;;  %3442 = vmatmul.mubr.msk.bf16.gmra.mrb[92].mxu1 %vm1431_vm2, %v1404_v31  ;;  %v1327_v41 = vmax.f32 %v1111_v34, 0.0 }
 0x1b7   : > { %v1106_v40 = vadd.f32 %v3903_v48, %v1105_v39  ;;  %v1325_v43 = vmax.f32 %v1103_v36, 0.0 }
 0x1b8   : > { %v1328_v42 = vmax.f32 %v1114_v38, 0.0 }
 0x1b9   : > { %v1326_v44 = vmax.f32 %v1106_v40, 0.0 }
 0x1ba   : > { %v1406_v45 = vpack.c.bf16 %v1328_v42, %v1327_v41 }
 0x1bb   : > { %v1405_v46 = vpack.c.bf16 %v1326_v44, %v1325_v43  ;;  %v3321_v47 = vpop.f32.mrb[100].mxu0 }
 0x1bc   : > { %v1127_v49 = vadd.f32 %v3321_v47, %v3903_v48  ;;  %v1118_v50 = vpop.f32.mrb[101].mxu0 }
 0x1bd   : > { %v1119_v51 = vadd.f32 %v3903_v48, %v1118_v50  ;;  %v3322_v52 = vpop.f32.mrb[102].mxu0  ;;  %3445 = vmatprep.mubr.msk.bf16.mxu1 %vm1431_vm2, %v1405_v46 }
 0x1be   : > { %v1130_v53 = vadd.f32 %v3322_v52, %v3903_v48  ;;  %v1121_v54 = vpop.f32.mrb[103].mxu0  ;;  %3446 = vmatmul.mubr.msk.bf16.gmra.mrb[96].mxu1 %vm1431_vm2, %v1406_v45  ;;  %v1331_v56 = vmax.f32 %v1127_v49, 0.0 }
 0x1bf   : > { %v1122_v55 = vadd.f32 %v3903_v48, %v1121_v54  ;;  %v1329_v58 = vmax.f32 %v1119_v51, 0.0 }
 0x1c0   : > { %v1332_v57 = vmax.f32 %v1130_v53, 0.0 }
 0x1c1   : > { %v1330_v59 = vmax.f32 %v1122_v55, 0.0 }
 0x1c2   : > { %v1408_v60 = vpack.c.bf16 %v1332_v57, %v1331_v56 }
 0x1c3   : > { %v1407_v61 = vpack.c.bf16 %v1330_v59, %v1329_v58  ;;  %v3325_v62 = vpop.f32.mrb[104].mxu0 }
 0x1c4   : > { %v1143_v63 = vadd.f32 %v3325_v62, %v3903_v48  ;;  %v1134_v0 = vpop.f32.mrb[105].mxu0 }
 0x1c5   : > { %v1135_v1 = vadd.f32 %v3903_v48, %v1134_v0  ;;  %v3326_v2 = vpop.f32.mrb[106].mxu0  ;;  %3449 = vmatprep.mubr.msk.bf16.mxu1 %vm1431_vm2, %v1407_v61 }
 0x1c6   : > { %v1146_v3 = vadd.f32 %v3326_v2, %v3903_v48  ;;  %v1137_v4 = vpop.f32.mrb[107].mxu0  ;;  %3450 = vmatmul.mubr.msk.bf16.gmra.mrb[100].mxu1 %vm1431_vm2, %v1408_v60  ;;  %v1335_v6 = vmax.f32 %v1143_v63, 0.0  ;;  %v4124_v63 = vld [vmem:[%s4504_s2] ss:$0 sm:$0xff] }
 0x1c7   : > { %v1138_v5 = vadd.f32 %v3903_v48, %v1137_v4  ;;  %v1333_v8 = vmax.f32 %v1135_v1, 0.0 }
 0x1c8   : > { %v1336_v7 = vmax.f32 %v1146_v3, 0.0 }
 0x1c9   : > { %v1334_v9 = vmax.f32 %v1138_v5, 0.0 }
 0x1ca   : > { %v1410_v10 = vpack.c.bf16 %v1336_v7, %v1335_v6 }
 0x1cb   : > { %v1409_v11 = vpack.c.bf16 %v1334_v9, %v1333_v8  ;;  %v3329_v12 = vpop.f32.mrb[108].mxu0 }
 0x1cc   : > { %v1159_v13 = vadd.f32 %v3329_v12, %v3903_v48  ;;  %v1150_v14 = vpop.f32.mrb[109].mxu0 }
 0x1cd   : > { %v1151_v15 = vadd.f32 %v3903_v48, %v1150_v14  ;;  %v3330_v16 = vpop.f32.mrb[110].mxu0  ;;  %3453 = vmatprep.mubr.msk.bf16.mxu1 %vm1431_vm2, %v1409_v11 }
 0x1ce   : > { %v1162_v17 = vadd.f32 %v3330_v16, %v3903_v48  ;;  %v1153_v18 = vpop.f32.mrb[111].mxu0  ;;  %3454 = vmatmul.mubr.msk.bf16.gmra.mrb[104].mxu1 %vm1431_vm2, %v1410_v10  ;;  %v1339_v21 = vmax.f32 %v1159_v13, 0.0 }
 0x1cf   : > { %v1154_v20 = vadd.f32 %v3903_v48, %v1153_v18  ;;  %v1337_v24 = vmax.f32 %v1151_v15, 0.0 }
 0x1d0   : > { %v1340_v22 = vmax.f32 %v1162_v17, 0.0 }
 0x1d1   : > { %v3351_v23 = vpop.f32.mrb[0].mxu1  ;;  %v1338_v25 = vmax.f32 %v1154_v20, 0.0 }
 0x1d2   : > { %v1667_v26 = vadd.f32 %v3351_v23, %v4101_v19  ;;  %v1658_v27 = vpop.f32.mrb[1].mxu1  ;;  %v1412_v28 = vpack.c.bf16 %v1340_v22, %v1339_v21 }
 0x1d3   : > { %v1659_v29 = vadd.f32 %v4101_v19, %v1658_v27  ;;  %v3352_v30 = vpop.f32.mrb[2].mxu1  ;;  %v1411_v31 = vpack.c.bf16 %v1338_v25, %v1337_v24  ;;  %v3333_v32 = vpop.f32.mrb[112].mxu0 }
 0x1d4   : > { %v1670_v33 = vadd.f32 %v3352_v30, %v4101_v19  ;;  %v1661_v34 = vpop.f32.mrb[3].mxu1  ;;  %v1175_v35 = vadd.f32 %v3333_v32, %v3903_v48  ;;  %v1166_v36 = vpop.f32.mrb[113].mxu0  ;;  %v2171_v40 = vmax.f32 %v1667_v26, 0.0 }
 0x1d5   : > { %v1662_v37 = vadd.f32 %v4101_v19, %v1661_v34  ;;  %v1167_v38 = vadd.f32 %v3903_v48, %v1166_v36  ;;  %v3334_v39 = vpop.f32.mrb[114].mxu0  ;;  %3457 = vmatprep.mubr.msk.bf16.mxu1 %vm1431_vm2, %v1411_v31  ;;  %v2169_v44 = vmax.f32 %v1659_v29, 0.0 }
 0x1d6   : > { %v2172_v41 = vmax.f32 %v1670_v33, 0.0  ;;  %v1178_v42 = vadd.f32 %v3334_v39, %v3903_v48  ;;  %v1169_v43 = vpop.f32.mrb[115].mxu0  ;;  %3458 = vmatmul.mubr.msk.bf16.gmra.mrb[108].mxu1 %vm1431_vm2, %v1412_v28  ;;  %v1343_v49 = vmax.f32 %v1175_v35, 0.0 }
 0x1d7   : > { %v2170_v45 = vmax.f32 %v1662_v37, 0.0  ;;  %v1170_v46 = vadd.f32 %v3903_v48, %v1169_v43  ;;  %v1341_v53 = vmax.f32 %v1167_v38, 0.0 }
 0x1d8   : > { %v4114_v47 = vpack.c.bf16 %v2172_v41, %v2171_v40  ;;  %v1344_v50 = vmax.f32 %v1178_v42, 0.0 }
 0x1d9   : > { %v4116_v51 = vpack.c.bf16 %v2170_v45, %v2169_v44  ;;  %v3355_v52 = vpop.f32.mrb[4].mxu1  ;;  %v1342_v54 = vmax.f32 %v1170_v46, 0.0 }
 0x1da   : > { %v1683_v55 = vadd.f32 %v3355_v52, %v4101_v19  ;;  %v1674_v56 = vpop.f32.mrb[5].mxu1  ;;  %v1414_v57 = vpack.c.bf16 %v1344_v50, %v1343_v49 }
 0x1db   : > { %v1675_v58 = vadd.f32 %v4101_v19, %v1674_v56  ;;  %v3356_v59 = vpop.f32.mrb[6].mxu1  ;;  %v1413_v60 = vpack.c.bf16 %v1342_v54, %v1341_v53  ;;  %v3337_v61 = vpop.f32.mrb[116].mxu0 }
 0x1dc   : > { %v1686_v48 = vadd.f32 %v3356_v59, %v4101_v19  ;;  %v1677_v62 = vpop.f32.mrb[7].mxu1  ;;  %v1191_v0 = vadd.f32 %v4124_v63, %v3337_v61  ;;  %v1182_v1 = vpop.f32.mrb[117].mxu0  ;;  %v2175_v5 = vmax.f32 %v1683_v55, 0.0 }
 0x1dd   : > { %v1678_v2 = vadd.f32 %v4101_v19, %v1677_v62  ;;  %3461 = vmatprep.mubr.msk.bf16.mxu1 %vm1431_vm2, %v1413_v60  ;;  %v1183_v3 = vadd.f32 %v4124_v63, %v1182_v1  ;;  %v3338_v4 = vpop.f32.mrb[118].mxu0  ;;  %v2173_v10 = vmax.f32 %v1675_v58, 0.0 }
 0x1de   : > { %v2176_v6 = vmax.f32 %v1686_v48, 0.0  ;;  %3462 = vmatmul.mubr.msk.bf16.gmra.mrb[112].mxu1 %vm1431_vm2, %v1414_v57  ;;  %v1347_v7 = vmax.f32 %v1191_v0, 0.0  ;;  %v1194_v8 = vadd.f32 %v4124_v63, %v3338_v4  ;;  %v1185_v9 = vpop.f32.mrb[119].mxu0 }
 0x1df   : > { %v2174_v11 = vmax.f32 %v1678_v2, 0.0  ;;  %v1345_v12 = vmax.f32 %v1183_v3, 0.0  ;;  %v1186_v13 = vadd.f32 %v4124_v63, %v1185_v9 }
 0x1e0   : > { %v4133_v14 = vpack.c.bf16 %v2176_v6, %v2175_v5  ;;  %v1348_v15 = vmax.f32 %v1194_v8, 0.0 }
 0x1e1   : > { %v4135_v16 = vpack.c.bf16 %v2174_v11, %v2173_v10  ;;  %v3359_v17 = vpop.f32.mrb[8].mxu1  ;;  %v1346_v18 = vmax.f32 %v1186_v13, 0.0 }
 0x1e2   : > { %v1699_v20 = vadd.f32 %v3359_v17, %v4101_v19  ;;  %v1690_v21 = vpop.f32.mrb[9].mxu1  ;;  %v1416_v22 = vpack.c.bf16 %v1348_v15, %v1347_v7 }
 0x1e3   : > { %v1691_v23 = vadd.f32 %v4101_v19, %v1690_v21  ;;  %v3360_v24 = vpop.f32.mrb[10].mxu1  ;;  %v1415_v25 = vpack.c.bf16 %v1346_v18, %v1345_v12  ;;  %v3341_v26 = vpop.f32.mrb[120].mxu0 }
 0x1e4   : > { %v1702_v27 = vadd.f32 %v3360_v24, %v4101_v19  ;;  %v1693_v28 = vpop.f32.mrb[11].mxu1  ;;  %v1207_v29 = vadd.f32 %v4124_v63, %v3341_v26  ;;  %v1198_v30 = vpop.f32.mrb[121].mxu0  ;;  %v2179_v34 = vmax.f32 %v1699_v20, 0.0 }
 0x1e5   : > { %v1694_v31 = vadd.f32 %v4101_v19, %v1693_v28  ;;  %3465 = vmatprep.mubr.msk.bf16.mxu1 %vm1431_vm2, %v1415_v25  ;;  %v1199_v32 = vadd.f32 %v4124_v63, %v1198_v30  ;;  %v3342_v33 = vpop.f32.mrb[122].mxu0  ;;  %v2177_v39 = vmax.f32 %v1691_v23, 0.0 }
 0x1e6   : > { %v2180_v35 = vmax.f32 %v1702_v27, 0.0  ;;  %3466 = vmatmul.mubr.msk.bf16.gmra.mrb[116].mxu1 %vm1431_vm2, %v1416_v22  ;;  %v1351_v36 = vmax.f32 %v1207_v29, 0.0  ;;  %v1210_v37 = vadd.f32 %v4124_v63, %v3342_v33  ;;  %v1201_v38 = vpop.f32.mrb[123].mxu0 }
 0x1e7   : > { %v2178_v40 = vmax.f32 %v1694_v31, 0.0  ;;  %v1349_v41 = vmax.f32 %v1199_v32, 0.0  ;;  %v1202_v42 = vadd.f32 %v4124_v63, %v1201_v38  ;;  %v2297_v31 = vld [vmem:[%s4507_s5] sm:$0x1] }
 0x1e8   : > { %v4147_v43 = vpack.c.bf16 %v2180_v35, %v2179_v34  ;;  %v1352_v44 = vmax.f32 %v1210_v37, 0.0  ;;  %v4174_v34 = vpack.c.bf16 %v2297_v31, %v2297_v31 }
 0x1e9   : > { %v4149_v45 = vpack.c.bf16 %v2178_v40, %v2177_v39  ;;  %v3363_v46 = vpop.f32.mrb[12].mxu1  ;;  %v1350_v49 = vmax.f32 %v1202_v42, 0.0  ;;  %v2377_v39 = vsel %vm1431_vm2, %v4116_v51, 0 }
 0x1ea   : > { %v1715_v50 = vadd.f32 %v3363_v46, %v4101_v19  ;;  %v1706_v52 = vpop.f32.mrb[13].mxu1  ;;  %v1418_v53 = vpack.c.bf16 %v1352_v44, %v1351_v36  ;;  %3177 = vmatprep.mubr.msk.bf16.mxu0 %vm1431_vm2, %v4174_v34 }
 0x1eb   : > { %v1707_v54 = vadd.f32 %v4101_v19, %v1706_v52  ;;  %v3364_v55 = vpop.f32.mrb[14].mxu1  ;;  %v1417_v56 = vpack.c.bf16 %v1350_v49, %v1349_v41  ;;  %v3345_v57 = vpop.f32.mrb[124].mxu0 }
 0x1ec   : > { %v1718_v58 = vadd.f32 %v3364_v55, %v4101_v19  ;;  %v1709_v59 = vpop.f32.mrb[15].mxu1  ;;  %v1223_v60 = vadd.f32 %v4124_v63, %v3345_v57  ;;  %v1214_v61 = vpop.f32.mrb[125].mxu0  ;;  %v2183_v1 = vmax.f32 %v1715_v50, 0.0 }
 0x1ed   : > { %v1710_v48 = vadd.f32 %v4101_v19, %v1709_v59  ;;  %3469 = vmatprep.mubr.msk.bf16.mxu1 %vm1431_vm2, %v1417_v56  ;;  %v1215_v62 = vadd.f32 %v4124_v63, %v1214_v61  ;;  %v3346_v0 = vpop.f32.mrb[126].mxu0  ;;  %v2181_v6 = vmax.f32 %v1707_v54, 0.0 }
 0x1ee   : > { %v2184_v2 = vmax.f32 %v1718_v58, 0.0  ;;  %3470 = vmatmul.mubr.msk.bf16.gmra.mrb[120].mxu1 %vm1431_vm2, %v1418_v53  ;;  %v1355_v3 = vmax.f32 %v1223_v60, 0.0  ;;  %v1226_v4 = vadd.f32 %v4124_v63, %v3346_v0  ;;  %v1217_v5 = vpop.f32.mrb[127].mxu0  ;;  %v2380_v58 = vsel %vm1431_vm2, %v4114_v47, 0 }
 0x1ef   : > { %v2182_v7 = vmax.f32 %v1710_v48, 0.0  ;;  %v1353_v8 = vmax.f32 %v1215_v62, 0.0  ;;  %v1218_v9 = vadd.f32 %v4124_v63, %v1217_v5 }
 0x1f0   : > { %v4161_v10 = vpack.c.bf16 %v2184_v2, %v2183_v1  ;;  %v1356_v11 = vmax.f32 %v1226_v4, 0.0 }
 0x1f1   : > { %v4163_v12 = vpack.c.bf16 %v2182_v7, %v2181_v6  ;;  %v3367_v13 = vpop.f32.mrb[16].mxu1  ;;  %v1354_v15 = vmax.f32 %v1218_v9, 0.0 }
 0x1f2   : > { %v1731_v17 = vadd.f32 %v3367_v13, %v4101_v19  ;;  %v1722_v18 = vpop.f32.mrb[17].mxu1  ;;  %v1420_v20 = vpack.c.bf16 %v1356_v11, %v1355_v3 }
 0x1f3   : > { %v1723_v21 = vadd.f32 %v4101_v19, %v1722_v18  ;;  %v3368_v22 = vpop.f32.mrb[18].mxu1  ;;  %v1419_v23 = vpack.c.bf16 %v1354_v15, %v1353_v8  ;;  %v2383_v8 = vsel %vm1431_vm2, %v4135_v16, 0 }
 0x1f4   : > { %v1734_v24 = vadd.f32 %v3368_v22, %v4101_v19  ;;  %v1725_v25 = vpop.f32.mrb[19].mxu1  ;;  %v2187_v26 = vmax.f32 %v1731_v17, 0.0 }
 0x1f5   : > { %v1726_v63 = vadd.f32 %v4101_v19, %v1725_v25  ;;  %3473 = vmatprep.mubr.msk.bf16.mxu1 %vm1431_vm2, %v1419_v23  ;;  %v2185_v28 = vmax.f32 %v1723_v21, 0.0 }
 0x1f6   : > { %v2188_v27 = vmax.f32 %v1734_v24, 0.0  ;;  %3474 = vmatmul.mubr.msk.bf16.gmra.mrb[124].mxu1 %vm1431_vm2, %v1420_v20 }
 0x1f7   : > { %v2186_v29 = vmax.f32 %v1726_v63, 0.0  ;;  %3159 = vmatprep.mubr.msk.bf16.mxu1 %vm1431_vm2, %v4174_v34 }
 0x1f8   : > { %v2308_v30 = vpack.c.bf16 %v2188_v27, %v2187_v26  ;;  %v2386_v26 = vsel %vm1431_vm2, %v4133_v14, 0 }
 0x1f9   : > { %v2307_v32 = vpack.c.bf16 %v2186_v29, %v2185_v28  ;;  %v3371_v33 = vpop.f32.mrb[20].mxu1 }
 0x1fa   : > { %v1747_v35 = vadd.f32 %v3371_v33, %v4101_v19  ;;  %v1738_v36 = vpop.f32.mrb[21].mxu1 }
 0x1fb   : > { %v1739_v37 = vadd.f32 %v4101_v19, %v1738_v36  ;;  %v3372_v38 = vpop.f32.mrb[22].mxu1  ;;  %3478 = vmatprep.subr.msk.bf16.mxu1 %vm1431_vm2, %v2307_v32 }
 0x1fc   : > { %v1750_v40 = vadd.f32 %v3372_v38, %v4101_v19  ;;  %v1741_v41 = vpop.f32.mrb[23].mxu1  ;;  %3144 = vmatpush3.bf16.xpose.msra.mxu1 %v2377_v39  ;;  %v2191_v44 = vmax.f32 %v1747_v35, 0.0 }
 0x1fd   : > { %v1742_v42 = vadd.f32 %v4101_v19, %v1741_v41  ;;  %3479 = vmatprep.subr.msk.bf16.mxu1 %vm1431_vm2, %v2308_v30  ;;  %v2189_v49 = vmax.f32 %v1739_v37, 0.0  ;;  %v2389_v41 = vsel %vm1431_vm2, %v4149_v45, 0 }
 0x1fe   : > { %v2192_v46 = vmax.f32 %v1750_v40, 0.0 }
 0x1ff   : > { %v2190_v50 = vmax.f32 %v1742_v42, 0.0 }
 0x200   : > { %v2310_v52 = vpack.c.bf16 %v2192_v46, %v2191_v44 }
 0x201   : > { %v2309_v51 = vpack.c.bf16 %v2190_v50, %v2189_v49  ;;  %v3375_v53 = vpop.f32.mrb[24].mxu1 }
 0x202   : > { %v1763_v54 = vadd.f32 %v3375_v53, %v4101_v19  ;;  %v1754_v55 = vpop.f32.mrb[25].mxu1 }
 0x203   : > { %v1755_v56 = vadd.f32 %v4101_v19, %v1754_v55  ;;  %v3376_v57 = vpop.f32.mrb[26].mxu1 }
 0x204   : > { %v1766_v59 = vadd.f32 %v3376_v57, %v4101_v19  ;;  %v1757_v60 = vpop.f32.mrb[27].mxu1  ;;  %3146 = vmatpush3.bf16.xpose.msra.mxu1 %v2380_v58  ;;  %v2195_v48 = vmax.f32 %v1763_v54, 0.0 }
 0x205   : > { %v1758_v61 = vadd.f32 %v4101_v19, %v1757_v60  ;;  %3480 = vmatprep.subr.msk.bf16.mxu1 %vm1431_vm2, %v2309_v51  ;;  %v2193_v0 = vmax.f32 %v1755_v56, 0.0 }
 0x206   : > { %v2196_v62 = vmax.f32 %v1766_v59, 0.0  ;;  %v2392_v59 = vsel %vm1431_vm2, %v4147_v43, 0 }
 0x207   : > { %v2194_v1 = vmax.f32 %v1758_v61, 0.0 }
 0x208   : > { %v2312_v2 = vpack.c.bf16 %v2196_v62, %v2195_v48 }
 0x209   : > { %v2311_v3 = vpack.c.bf16 %v2194_v1, %v2193_v0  ;;  %v3379_v4 = vpop.f32.mrb[28].mxu1 }
 0x20a   : > { %v1779_v5 = vadd.f32 %v3379_v4, %v4101_v19  ;;  %v1770_v6 = vpop.f32.mrb[29].mxu1 }
 0x20b   : > { %v1771_v47 = vadd.f32 %v4101_v19, %v1770_v6  ;;  %v3380_v7 = vpop.f32.mrb[30].mxu1 }
 0x20c   : > { %v1782_v9 = vadd.f32 %v3380_v7, %v4101_v19  ;;  %v1773_v11 = vpop.f32.mrb[31].mxu1  ;;  %3148 = vmatpush3.bf16.xpose.msra.mxu1 %v2383_v8  ;;  %v2199_v15 = vmax.f32 %v1779_v5, 0.0  ;;  %v2395_v8 = vsel %vm1431_vm2, %v4163_v12, 0 }
 0x20d   : > { %v1774_v13 = vadd.f32 %v4101_v19, %v1773_v11  ;;  %3481 = vmatprep.subr.msk.bf16.mxu1 %vm1431_vm2, %v2310_v52  ;;  %v2197_v18 = vmax.f32 %v1771_v47, 0.0 }
 0x20e   : > { %v2200_v17 = vmax.f32 %v1782_v9, 0.0 }
 0x20f   : > { %v2198_v20 = vmax.f32 %v1774_v13, 0.0 }
 0x210   : > { %v4202_v21 = vpack.c.bf16 %v2200_v17, %v2199_v15 }
 0x211   : > { %v2313_v22 = vpack.c.bf16 %v2198_v20, %v2197_v18  ;;  %v3383_v23 = vpop.f32.mrb[32].mxu1 }
 0x212   : > { %v1795_v24 = vadd.f32 %v3383_v23, %v4101_v19  ;;  %v1786_v25 = vpop.f32.mrb[33].mxu1 }
 0x213   : > { %v1787_v16 = vadd.f32 %v4101_v19, %v1786_v25  ;;  %v3384_v63 = vpop.f32.mrb[34].mxu1 }
 0x214   : > { %v1798_v27 = vadd.f32 %v3384_v63, %v4101_v19  ;;  %v1789_v28 = vpop.f32.mrb[35].mxu1  ;;  %3150 = vmatpush3.bf16.xpose.msra.mxu1 %v2386_v26  ;;  %v2203_v30 = vmax.f32 %v1795_v24, 0.0  ;;  %v2398_v26 = vsel %vm1431_vm2, %v4161_v10, 0 }
 0x215   : > { %v1790_v29 = vadd.f32 %v4101_v19, %v1789_v28  ;;  %3482 = vmatprep.subr.msk.bf16.mxu1 %vm1431_vm2, %v2311_v3  ;;  %v2201_v32 = vmax.f32 %v1787_v16, 0.0 }
 0x216   : > { %v2204_v31 = vmax.f32 %v1798_v27, 0.0 }
 0x217   : > { %v2202_v33 = vmax.f32 %v1790_v29, 0.0 }
 0x218   : > { %v4211_v35 = vpack.c.bf16 %v2204_v31, %v2203_v30 }
 0x219   : > { %v4213_v36 = vpack.c.bf16 %v2202_v33, %v2201_v32  ;;  %v3387_v37 = vpop.f32.mrb[36].mxu1 }
 0x21a   : > { %v1811_v38 = vadd.f32 %v3387_v37, %v4101_v19  ;;  %v1802_v14 = vpop.f32.mrb[37].mxu1 }
 0x21b   : > { %v1803_v39 = vadd.f32 %v4101_v19, %v1802_v14  ;;  %v3388_v40 = vpop.f32.mrb[38].mxu1  ;;  %v2425_v10 = vsel %vm1431_vm2, %v4213_v36, 0 }
 0x21c   : > { %v1814_v42 = vadd.f32 %v3388_v40, %v4101_v19  ;;  %v1805_v44 = vpop.f32.mrb[39].mxu1  ;;  %3152 = vmatpush3.bf16.xpose.msra.mxu1 %v2389_v41  ;;  %v2207_v49 = vmax.f32 %v1811_v38, 0.0 }
 0x21d   : > { %v1806_v46 = vadd.f32 %v4101_v19, %v1805_v44  ;;  %3483 = vmatprep.subr.msk.bf16.mxu1 %vm1431_vm2, %v2312_v2  ;;  %v2205_v52 = vmax.f32 %v1803_v39, 0.0 }
 0x21e   : > { %v2208_v50 = vmax.f32 %v1814_v42, 0.0 }
 0x21f   : > { %v2206_v51 = vmax.f32 %v1806_v46, 0.0 }
 0x220   : > { %v4222_v53 = vpack.c.bf16 %v2208_v50, %v2207_v49 }
 0x221   : > { %v4224_v54 = vpack.c.bf16 %v2206_v51, %v2205_v52  ;;  %v3391_v55 = vpop.f32.mrb[40].mxu1 }
 0x222   : > { %v1827_v56 = vadd.f32 %v3391_v55, %v4101_v19  ;;  %v1818_v45 = vpop.f32.mrb[41].mxu1 }
 0x223   : > { %v1819_v57 = vadd.f32 %v4101_v19, %v1818_v45  ;;  %v3392_v58 = vpop.f32.mrb[42].mxu1 }
 0x224   : > { %v1830_v60 = vadd.f32 %v3392_v58, %v4101_v19  ;;  %v1821_v61 = vpop.f32.mrb[43].mxu1  ;;  %3154 = vmatpush3.bf16.xpose.msra.mxu1 %v2392_v59  ;;  %v2211_v62 = vmax.f32 %v1827_v56, 0.0  ;;  %v2428_v58 = vsel %vm1431_vm2, %v4211_v35, 0 }
 0x225   : > { %v1822_v48 = vadd.f32 %v4101_v19, %v1821_v61  ;;  %3484 = vmatprep.subr.msk.bf16.mxu1 %vm1431_vm2, %v2313_v22  ;;  %v2209_v1 = vmax.f32 %v1819_v57, 0.0 }
 0x226   : > { %v2212_v0 = vmax.f32 %v1830_v60, 0.0 }
 0x227   : > { %v2210_v2 = vmax.f32 %v1822_v48, 0.0 }
 0x228   : > { %v4233_v3 = vpack.c.bf16 %v2212_v0, %v2211_v62 }
 0x229   : > { %v4235_v4 = vpack.c.bf16 %v2210_v2, %v2209_v1  ;;  %v3395_v5 = vpop.f32.mrb[44].mxu1 }
 0x22a   : > { %v1843_v6 = vadd.f32 %v3395_v5, %v4101_v19  ;;  %v1834_v43 = vpop.f32.mrb[45].mxu1 }
 0x22b   : > { %v1835_v47 = vadd.f32 %v4101_v19, %v1834_v43  ;;  %v3396_v7 = vpop.f32.mrb[46].mxu1 }
 0x22c   : > { %v1846_v9 = vadd.f32 %v3396_v7, %v4101_v19  ;;  %v1837_v11 = vpop.f32.mrb[47].mxu1  ;;  %3156 = vmatpush3.bf16.xpose.msra.mxu1 %v2395_v8  ;;  %v2215_v15 = vmax.f32 %v1843_v6, 0.0  ;;  %v2431_v8 = vsel %vm1431_vm2, %v4224_v54, 0 }
 0x22d   : > { %v1838_v13 = vadd.f32 %v4101_v19, %v1837_v11  ;;  %3485 = vmatprep.subr.msk.bf16.mxu1 %vm1431_vm2, %v4202_v21  ;;  %v2213_v18 = vmax.f32 %v1835_v47, 0.0 }
 0x22e   : > { %v2216_v17 = vmax.f32 %v1846_v9, 0.0 }
 0x22f   : > { %v2214_v20 = vmax.f32 %v1838_v13, 0.0 }
 0x230   : > { %v4245_v22 = vpack.c.bf16 %v2216_v17, %v2215_v15 }
 0x231   : > { %v4247_v23 = vpack.c.bf16 %v2214_v20, %v2213_v18  ;;  %v3399_v24 = vpop.f32.mrb[48].mxu1 }
 0x232   : > { %v1859_v12 = vadd.f32 %v3399_v24, %v4101_v19  ;;  %v1850_v25 = vpop.f32.mrb[49].mxu1 }
 0x233   : > { %v1851_v16 = vadd.f32 %v4101_v19, %v1850_v25  ;;  %v3400_v63 = vpop.f32.mrb[50].mxu1 }
 0x234   : > { %v1862_v21 = vadd.f32 %v3400_v63, %v4101_v19  ;;  %v1853_v27 = vpop.f32.mrb[51].mxu1  ;;  %3158 = vmatpush3.bf16.xpose.msra.mxu1 %v2398_v26  ;;  %v2219_v29 = vmax.f32 %v1859_v12, 0.0 }
 0x235   : > { %v1854_v28 = vadd.f32 %v4101_v19, %v1853_v27  ;;  %v2217_v31 = vmax.f32 %v1851_v16, 0.0 }
 0x236   : > { %v2220_v30 = vmax.f32 %v1862_v21, 0.0  ;;  %v2434_v21 = vsel %vm1431_vm2, %v4222_v53, 0 }
 0x237   : > { %v2218_v32 = vmax.f32 %v1854_v28, 0.0 }
 0x238   : > { %v2324_v33 = vpack.c.bf16 %v2220_v30, %v2219_v29 }
 0x239   : > { %v2323_v37 = vpack.c.bf16 %v2218_v32, %v2217_v31  ;;  %v3403_v38 = vpop.f32.mrb[52].mxu1 }
 0x23a   : > { %v1875_v14 = vadd.f32 %v3403_v38, %v4101_v19  ;;  %v1866_v39 = vpop.f32.mrb[53].mxu1 }
 0x23b   : > { %3486 = vmatprep.subr.msk.bf16.mxu0 %vm1431_vm2, %v2323_v37  ;;  %v1867_v40 = vadd.f32 %v4101_v19, %v1866_v39  ;;  %v3404_v41 = vpop.f32.mrb[54].mxu1  ;;  %3160 = vmatmul.mubr.msk.bf16.vlgmr.msra.gmra.mrb[128].mxu1 %vm1431_vm2, %v4174_v34 }
 0x23c   : > { %3162 = vmatpush3.bf16.xpose.msra.mxu0 %v2425_v10  ;;  %v1878_v42 = vadd.f32 %v3404_v41, %v4101_v19  ;;  %v1869_v44 = vpop.f32.mrb[55].mxu1  ;;  %3195 = vmatprep.mubr.msk.bf16.mxu1 %vm1431_vm2, %v4174_v34  ;;  %v2223_v49 = vmax.f32 %v1875_v14, 0.0  ;;  %v2437_v41 = vsel %vm1431_vm2, %v4235_v4, 0 }
 0x23d   : > { %3487 = vmatprep.subr.msk.bf16.mxu0 %vm1431_vm2, %v2324_v33  ;;  %v1870_v46 = vadd.f32 %v4101_v19, %v1869_v44  ;;  %v2221_v36 = vmax.f32 %v1867_v40, 0.0 }
 0x23e   : > { %v2224_v50 = vmax.f32 %v1878_v42, 0.0 }
 0x23f   : > { %v2222_v52 = vmax.f32 %v1870_v46, 0.0 }
 0x240   : > { %v2326_v51 = vpack.c.bf16 %v2224_v50, %v2223_v49 }
 0x241   : > { %v2325_v55 = vpack.c.bf16 %v2222_v52, %v2221_v36  ;;  %v3407_v56 = vpop.f32.mrb[56].mxu1 }
 0x242   : > { %v1891_v45 = vadd.f32 %v3407_v56, %v4101_v19  ;;  %v1882_v57 = vpop.f32.mrb[57].mxu1 }
 0x243   : > { %v1883_v59 = vadd.f32 %v4101_v19, %v1882_v57  ;;  %v3408_v60 = vpop.f32.mrb[58].mxu1 }
 0x244   : > { %3164 = vmatpush3.bf16.xpose.msra.mxu0 %v2428_v58  ;;  %v1894_v61 = vadd.f32 %v3408_v60, %v4101_v19  ;;  %v1885_v48 = vpop.f32.mrb[59].mxu1  ;;  %v2227_v0 = vmax.f32 %v1891_v45, 0.0 }
 0x245   : > { %3488 = vmatprep.subr.msk.bf16.mxu0 %vm1431_vm2, %v2325_v55  ;;  %v1886_v62 = vadd.f32 %v4101_v19, %v1885_v48  ;;  %v2225_v2 = vmax.f32 %v1883_v59, 0.0  ;;  %v2440_v59 = vsel %vm1431_vm2, %v4233_v3, 0 }
 0x246   : > { %v2228_v1 = vmax.f32 %v1894_v61, 0.0 }
 0x247   : > { %v2226_v5 = vmax.f32 %v1886_v62, 0.0 }
 0x248   : > { %v2328_v6 = vpack.c.bf16 %v2228_v1, %v2227_v0 }
 0x249   : > { %v2327_v43 = vpack.c.bf16 %v2226_v5, %v2225_v2  ;;  %v3411_v47 = vpop.f32.mrb[60].mxu1 }
 0x24a   : > { %v1907_v35 = vadd.f32 %v3411_v47, %v4101_v19  ;;  %v1898_v7 = vpop.f32.mrb[61].mxu1 }
 0x24b   : > { %v1899_v9 = vadd.f32 %v4101_v19, %v1898_v7  ;;  %v3412_v11 = vpop.f32.mrb[62].mxu1 }
 0x24c   : > { %3166 = vmatpush3.bf16.xpose.msra.mxu0 %v2431_v8  ;;  %v1910_v13 = vadd.f32 %v3412_v11, %v4101_v19  ;;  %v1901_v15 = vpop.f32.mrb[63].mxu1  ;;  %v2231_v18 = vmax.f32 %v1907_v35, 0.0  ;;  %v2443_v8 = vsel %vm1431_vm2, %v4247_v23, 0 }
 0x24d   : > { %3489 = vmatprep.subr.msk.bf16.mxu0 %vm1431_vm2, %v2326_v51  ;;  %v1902_v17 = vadd.f32 %v4101_v19, %v1901_v15  ;;  %v2229_v24 = vmax.f32 %v1899_v9, 0.0 }
 0x24e   : > { %v2232_v20 = vmax.f32 %v1910_v13, 0.0 }
 0x24f   : > { %v2230_v12 = vmax.f32 %v1902_v17, 0.0 }
 0x250   : > { %v2330_v25 = vpack.c.bf16 %v2232_v20, %v2231_v18 }
 0x251   : > { %v2329_v16 = vpack.c.bf16 %v2230_v12, %v2229_v24  ;;  %v3415_v63 = vpop.f32.mrb[64].mxu1 }
 0x252   : > { %v1923_v54 = vadd.f32 %v3415_v63, %v4101_v19  ;;  %v1914_v26 = vpop.f32.mrb[65].mxu1 }
 0x253   : > { %v1915_v27 = vadd.f32 %v4101_v19, %v1914_v26  ;;  %v3416_v28 = vpop.f32.mrb[66].mxu1 }
 0x254   : > { %3168 = vmatpush3.bf16.xpose.msra.mxu0 %v2434_v21  ;;  %v1926_v29 = vadd.f32 %v3416_v28, %v4101_v19  ;;  %v1917_v30 = vpop.f32.mrb[67].mxu1  ;;  %v2235_v32 = vmax.f32 %v1923_v54, 0.0  ;;  %v2446_v21 = vsel %vm1431_vm2, %v4245_v22, 0 }
 0x255   : > { %3490 = vmatprep.subr.msk.bf16.mxu0 %vm1431_vm2, %v2327_v43  ;;  %v1918_v31 = vadd.f32 %v4101_v19, %v1917_v30  ;;  %v2233_v37 = vmax.f32 %v1915_v27, 0.0 }
 0x256   : > { %v2236_v33 = vmax.f32 %v1926_v29, 0.0 }
 0x257   : > { %v2234_v38 = vmax.f32 %v1918_v31, 0.0 }
 0x258   : > { %v4288_v14 = vpack.c.bf16 %v2236_v33, %v2235_v32 }
 0x259   : > { %v4290_v39 = vpack.c.bf16 %v2234_v38, %v2233_v37  ;;  %v3419_v53 = vpop.f32.mrb[68].mxu1 }
 0x25a   : > { %v1939_v10 = vadd.f32 %v3419_v53, %v4101_v19  ;;  %v1930_v40 = vpop.f32.mrb[69].mxu1 }
 0x25b   : > { %v1931_v42 = vadd.f32 %v4101_v19, %v1930_v40  ;;  %v3420_v44 = vpop.f32.mrb[70].mxu1  ;;  %v2473_v22 = vsel %vm1431_vm2, %v4290_v39, 0 }
 0x25c   : > { %3170 = vmatpush3.bf16.xpose.msra.mxu0 %v2437_v41  ;;  %v1942_v46 = vadd.f32 %v3420_v44, %v4101_v19  ;;  %v1933_v49 = vpop.f32.mrb[71].mxu1  ;;  %v2239_v36 = vmax.f32 %v1939_v10, 0.0 }
 0x25d   : > { %3491 = vmatprep.subr.msk.bf16.mxu0 %vm1431_vm2, %v2328_v6  ;;  %v1934_v50 = vadd.f32 %v4101_v19, %v1933_v49  ;;  %v2237_v51 = vmax.f32 %v1931_v42, 0.0 }
 0x25e   : > { %v2240_v52 = vmax.f32 %v1942_v46, 0.0  ;;  %v2363_v46 = vld [vmem:[#allocation2] sm:$0x1] }
 0x25f   : > { %v2238_v55 = vmax.f32 %v1934_v50, 0.0 }
 0x260   : > { %v4299_v56 = vpack.c.bf16 %v2240_v52, %v2239_v36  ;;  %v3618_v52 = vmov 0  }
 0x261   : > { %v4301_v45 = vpack.c.bf16 %v2238_v55, %v2237_v51  ;;  %v3423_v4 = vpop.f32.mrb[72].mxu1  ;;  %3551 = vset.pattern.permute.xlu0 %v3618_v52 }
 0x262   : > { %v1955_v57 = vadd.f32 %v3423_v4, %v4101_v19  ;;  %v1946_v58 = vpop.f32.mrb[73].mxu1  ;;  %2366 = vperm.xlu0 %3551, %v2363_v46  }
 0x263   : > { %v1947_v60 = vadd.f32 %v4101_v19, %v1946_v58  ;;  %v3424_v61 = vpop.f32.mrb[74].mxu1 }
 0x264   : > { %3172 = vmatpush3.bf16.xpose.msra.mxu0 %v2440_v59  ;;  %v1958_v48 = vadd.f32 %v3424_v61, %v4101_v19  ;;  %v1949_v62 = vpop.f32.mrb[75].mxu1  ;;  %v2243_v1 = vmax.f32 %v1955_v57, 0.0 }
 0x265   : > { %3492 = vmatprep.subr.msk.bf16.mxu0 %vm1431_vm2, %v2329_v16  ;;  %v1950_v0 = vadd.f32 %v4101_v19, %v1949_v62  ;;  %v2241_v5 = vmax.f32 %v1947_v60, 0.0 }
 0x266   : > { %v2244_v2 = vmax.f32 %v1958_v48, 0.0  ;;  %v2476_v48 = vsel %vm1431_vm2, %v4288_v14, 0 }
 0x267   : > { %v2242_v6 = vmax.f32 %v1950_v0, 0.0 }
 0x268   : > { %v4310_v43 = vpack.c.bf16 %v2244_v2, %v2243_v1 }
 0x269   : > { %v4312_v47 = vpack.c.bf16 %v2242_v6, %v2241_v5  ;;  %v3427_v3 = vpop.f32.mrb[76].mxu1 }
 0x26a   : > { %v1971_v35 = vadd.f32 %v3427_v3, %v4101_v19  ;;  %v1962_v7 = vpop.f32.mrb[77].mxu1 }
 0x26b   : > { %v1963_v9 = vadd.f32 %v4101_v19, %v1962_v7  ;;  %v3428_v11 = vpop.f32.mrb[78].mxu1 }
 0x26c   : > { %3174 = vmatpush3.bf16.xpose.msra.mxu0 %v2443_v8  ;;  %v1974_v13 = vadd.f32 %v3428_v11, %v4101_v19  ;;  %v1965_v15 = vpop.f32.mrb[79].mxu1  ;;  %v2247_v18 = vmax.f32 %v1971_v35, 0.0 }
 0x26d   : > { %3493 = vmatprep.subr.msk.bf16.mxu0 %vm1431_vm2, %v2330_v25  ;;  %v1966_v17 = vadd.f32 %v4101_v19, %v1965_v15  ;;  %v2245_v24 = vmax.f32 %v1963_v9, 0.0  ;;  %v2479_v15 = vsel %vm1431_vm2, %v4301_v45, 0 }
 0x26e   : > { %v2248_v20 = vmax.f32 %v1974_v13, 0.0 }
 0x26f   : > { %v2246_v12 = vmax.f32 %v1966_v17, 0.0 }
 0x270   : > { %v4321_v16 = vpack.c.bf16 %v2248_v20, %v2247_v18 }
 0x271   : > { %v4323_v63 = vpack.c.bf16 %v2246_v12, %v2245_v24  ;;  %v3431_v23 = vpop.f32.mrb[80].mxu1 }
 0x272   : > { %v1987_v54 = vadd.f32 %v3431_v23, %v4101_v19  ;;  %v1978_v26 = vpop.f32.mrb[81].mxu1 }
 0x273   : > { %v1979_v27 = vadd.f32 %v4101_v19, %v1978_v26  ;;  %v3432_v25 = vpop.f32.mrb[82].mxu1 }
 0x274   : > { %3176 = vmatpush3.bf16.xpose.msra.mxu0 %v2446_v21  ;;  %v1990_v28 = vadd.f32 %v3432_v25, %v4101_v19  ;;  %v1981_v29 = vpop.f32.mrb[83].mxu1  ;;  %v2251_v31 = vmax.f32 %v1987_v54, 0.0 }
 0x275   : > { %v1982_v30 = vadd.f32 %v4101_v19, %v1981_v29  ;;  %v2249_v33 = vmax.f32 %v1979_v27, 0.0 }
 0x276   : > { %v2252_v32 = vmax.f32 %v1990_v28, 0.0 }
 0x277   : > { %v2250_v37 = vmax.f32 %v1982_v30, 0.0  ;;  %v2482_v30 = vsel %vm1431_vm2, %v4299_v56, 0 }
 0x278   : > { %v2340_v38 = vpack.c.bf16 %v2252_v32, %v2251_v31 }
 0x279   : > { %v2339_v53 = vpack.c.bf16 %v2250_v37, %v2249_v33  ;;  %v3435_v10 = vpop.f32.mrb[84].mxu1 }
 0x27a   : > { %v2003_v40 = vadd.f32 %v3435_v10, %v4101_v19  ;;  %v1994_v41 = vpop.f32.mrb[85].mxu1 }
 0x27b   : > { %3494 = vmatprep.subr.msk.bf16.mxu1 %vm1431_vm2, %v2339_v53  ;;  %v1995_v42 = vadd.f32 %v4101_v19, %v1994_v41  ;;  %v3436_v44 = vpop.f32.mrb[86].mxu1  ;;  %3178 = vmatmul.mubr.msk.bf16.vlgmr.msra.gmra.mrb[128].mxu0 %vm1431_vm2, %v4174_v34 }
 0x27c   : > { %3180 = vmatpush3.bf16.xpose.msra.mxu1 %v2473_v22  ;;  %v2006_v49 = vadd.f32 %v3436_v44, %v4101_v19  ;;  %v1997_v50 = vpop.f32.mrb[87].mxu1  ;;  %3213 = vmatprep.mubr.msk.bf16.mxu0 %vm1431_vm2, %v4174_v34  ;;  %v2255_v39 = vmax.f32 %v2003_v40, 0.0 }
 0x27d   : > { %3495 = vmatprep.subr.msk.bf16.mxu1 %vm1431_vm2, %v2340_v38  ;;  %v1998_v36 = vadd.f32 %v4101_v19, %v1997_v50  ;;  %v2253_v55 = vmax.f32 %v1995_v42, 0.0 }
 0x27e   : > { %v2256_v51 = vmax.f32 %v2006_v49, 0.0  ;;  %v2485_v49 = vsel %vm1431_vm2, %v4312_v47, 0 }
 0x27f   : > { %v2254_v4 = vmax.f32 %v1998_v36, 0.0 }
 0x280   : > { %v2342_v57 = vpack.c.bf16 %v2256_v51, %v2255_v39 }
 0x281   : > { %v2341_v58 = vpack.c.bf16 %v2254_v4, %v2253_v55  ;;  %v3439_v59 = vpop.f32.mrb[88].mxu1 }
 0x282   : > { %v2019_v60 = vadd.f32 %v3439_v59, %v4101_v19  ;;  %v2010_v61 = vpop.f32.mrb[89].mxu1 }
 0x283   : > { %v2011_v62 = vadd.f32 %v4101_v19, %v2010_v61  ;;  %v3440_v0 = vpop.f32.mrb[90].mxu1  ;;  %v4384_v61 = vld [vmem:[%s4506_s4] ss:$0 sm:$0xff] }
 0x284   : > { %3182 = vmatpush3.bf16.xpose.msra.mxu1 %v2476_v48  ;;  %v2022_v1 = vadd.f32 %v3440_v0, %v4101_v19  ;;  %v2013_v2 = vpop.f32.mrb[91].mxu1  ;;  %v2259_v6 = vmax.f32 %v2019_v60, 0.0 }
 0x285   : > { %3496 = vmatprep.subr.msk.bf16.mxu1 %vm1431_vm2, %v2341_v58  ;;  %v2014_v5 = vadd.f32 %v4101_v19, %v2013_v2  ;;  %v2257_v35 = vmax.f32 %v2011_v62, 0.0 }
 0x286   : > { %v2260_v3 = vmax.f32 %v2022_v1, 0.0 }
 0x287   : > { %v2258_v7 = vmax.f32 %v2014_v5, 0.0 }
 0x288   : > { %v2344_v8 = vpack.c.bf16 %v2260_v3, %v2259_v6 }
 0x289   : > { %v2343_v9 = vpack.c.bf16 %v2258_v7, %v2257_v35  ;;  %v3443_v11 = vpop.f32.mrb[92].mxu1 }
 0x28a   : > { %v2035_v14 = vadd.f32 %v3443_v11, %v4101_v19  ;;  %v2026_v13 = vpop.f32.mrb[93].mxu1 }
 0x28b   : > { %v2027_v17 = vadd.f32 %v4101_v19, %v2026_v13  ;;  %v3444_v18 = vpop.f32.mrb[94].mxu1 }
 0x28c   : > { %3184 = vmatpush3.bf16.xpose.msra.mxu1 %v2479_v15  ;;  %v2038_v20 = vadd.f32 %v3444_v18, %v4101_v19  ;;  %v2029_v24 = vpop.f32.mrb[95].mxu1  ;;  %v2263_v23 = vmax.f32 %v2035_v14, 0.0  ;;  %v2491_v15 = vsel %vm1431_vm2, %v4323_v63, 0 }
 0x28d   : > { %3497 = vmatprep.subr.msk.bf16.mxu1 %vm1431_vm2, %v2342_v57  ;;  %v2030_v12 = vadd.f32 %v4101_v19, %v2029_v24  ;;  %v2261_v26 = vmax.f32 %v2027_v17, 0.0 }
 0x28e   : > { %v2264_v54 = vmax.f32 %v2038_v20, 0.0 }
 0x28f   : > { %v2262_v21 = vmax.f32 %v2030_v12, 0.0 }
 0x290   : > { %v4357_v27 = vpack.c.bf16 %v2264_v54, %v2263_v23 }
 0x291   : > { %v2345_v25 = vpack.c.bf16 %v2262_v21, %v2261_v26  ;;  %v3447_v28 = vpop.f32.mrb[96].mxu1 }
 0x292   : > { %v2051_v45 = vadd.f32 %v3447_v28, %v4101_v19  ;;  %v2042_v29 = vpop.f32.mrb[97].mxu1 }
 0x293   : > { %v2043_v31 = vadd.f32 %v4101_v19, %v2042_v29  ;;  %v3448_v32 = vpop.f32.mrb[98].mxu1 }
 0x294   : > { %3186 = vmatpush3.bf16.xpose.msra.mxu1 %v2482_v30  ;;  %v2054_v33 = vadd.f32 %v3448_v32, %v4101_v19  ;;  %v2045_v37 = vpop.f32.mrb[99].mxu1  ;;  %v2267_v53 = vmax.f32 %v2051_v45, 0.0  ;;  %v2494_v32 = vsel %vm1431_vm2, %v4321_v16, 0 }
 0x295   : > { %3498 = vmatprep.subr.msk.bf16.mxu1 %vm1431_vm2, %v2343_v9  ;;  %v2046_v38 = vadd.f32 %v4101_v19, %v2045_v37  ;;  %v2265_v40 = vmax.f32 %v2043_v31, 0.0 }
 0x296   : > { %v2268_v10 = vmax.f32 %v2054_v33, 0.0 }
 0x297   : > { %v2266_v41 = vmax.f32 %v2046_v38, 0.0 }
 0x298   : > { %v4366_v22 = vpack.c.bf16 %v2268_v10, %v2267_v53 }
 0x299   : > { %v4368_v42 = vpack.c.bf16 %v2266_v41, %v2265_v40  ;;  %v3451_v56 = vpop.f32.mrb[100].mxu1 }
 0x29a   : > { %v2067_v44 = vadd.f32 %v3451_v56, %v4101_v19  ;;  %v2058_v46 = vpop.f32.mrb[101].mxu1 }
 0x29b   : > { %v2059_v50 = vadd.f32 %v4101_v19, %v2058_v46  ;;  %v3452_v36 = vpop.f32.mrb[102].mxu1  ;;  %v2521_v16 = vsel %vm1431_vm2, %v4368_v42, 0 }
 0x29c   : > { %3188 = vmatpush3.bf16.xpose.msra.mxu1 %v2485_v49  ;;  %v2070_v52 = vadd.f32 %v3452_v36, %v4101_v19  ;;  %v2061_v39 = vpop.f32.mrb[103].mxu1  ;;  %v2271_v55 = vmax.f32 %v2067_v44, 0.0 }
 0x29d   : > { %3499 = vmatprep.subr.msk.bf16.mxu1 %vm1431_vm2, %v2344_v8  ;;  %v2062_v51 = vadd.f32 %v4101_v19, %v2061_v39  ;;  %v2269_v57 = vmax.f32 %v2059_v50, 0.0  ;;  %v2488_v19 = vsel %vm1431_vm2, %v4310_v43, 0 }
 0x29e   : > { %v2272_v4 = vmax.f32 %v2070_v52, 0.0 }
 0x29f   : > { %v2270_v58 = vmax.f32 %v2062_v51, 0.0 }
 0x2a0   : > { %v4377_v59 = vpack.c.bf16 %v2272_v4, %v2271_v55 }
 0x2a1   : > { %v4379_v60 = vpack.c.bf16 %v2270_v58, %v2269_v57  ;;  %v3455_v47 = vpop.f32.mrb[104].mxu1 }
 0x2a2   : > { %v2083_v48 = vadd.f32 %v4384_v61, %v3455_v47  ;;  %v2074_v62 = vpop.f32.mrb[105].mxu1 }
 0x2a3   : > { %v2075_v0 = vadd.f32 %v4384_v61, %v2074_v62  ;;  %v3456_v1 = vpop.f32.mrb[106].mxu1 }
 0x2a4   : > { %3190 = vmatpush3.bf16.xpose.msra.mxu1 %v2488_v19  ;;  %v2086_v2 = vadd.f32 %v4384_v61, %v3456_v1  ;;  %v2077_v5 = vpop.f32.mrb[107].mxu1  ;;  %v2275_v3 = vmax.f32 %v2083_v48, 0.0 }
 0x2a5   : > { %3500 = vmatprep.subr.msk.bf16.mxu1 %vm1431_vm2, %v2345_v25  ;;  %v2078_v6 = vadd.f32 %v4384_v61, %v2077_v5  ;;  %v2273_v7 = vmax.f32 %v2075_v0, 0.0  ;;  %v2524_v0 = vsel %vm1431_vm2, %v4366_v22, 0 }
 0x2a6   : > { %v2276_v35 = vmax.f32 %v2086_v2, 0.0 }
 0x2a7   : > { %v2274_v8 = vmax.f32 %v2078_v6, 0.0 }
 0x2a8   : > { %v4393_v9 = vpack.c.bf16 %v2276_v35, %v2275_v3 }
 0x2a9   : > { %v4395_v11 = vpack.c.bf16 %v2274_v8, %v2273_v7  ;;  %v3459_v43 = vpop.f32.mrb[108].mxu1 }
 0x2aa   : > { %v2099_v14 = vadd.f32 %v4384_v61, %v3459_v43  ;;  %v2090_v13 = vpop.f32.mrb[109].mxu1 }
 0x2ab   : > { %v2091_v17 = vadd.f32 %v4384_v61, %v2090_v13  ;;  %v3460_v18 = vpop.f32.mrb[110].mxu1 }
 0x2ac   : > { %3192 = vmatpush3.bf16.xpose.msra.mxu1 %v2491_v15  ;;  %v2102_v20 = vadd.f32 %v4384_v61, %v3460_v18  ;;  %v2093_v24 = vpop.f32.mrb[111].mxu1  ;;  %v2279_v23 = vmax.f32 %v2099_v14, 0.0  ;;  %v2527_v18 = vsel %vm1431_vm2, %v4379_v60, 0  ;;  %v2530_v60 = vsel %vm1431_vm2, %v4377_v59, 0 }
 0x2ad   : > { %v2094_v12 = vadd.f32 %v4384_v61, %v2093_v24  ;;  %3501 = vmatprep.subr.msk.bf16.mxu1 %vm1431_vm2, %v4357_v27  ;;  %v2277_v26 = vmax.f32 %v2091_v17, 0.0 }
 0x2ae   : > { %v2280_v54 = vmax.f32 %v2102_v20, 0.0 }
 0x2af   : > { %v2278_v21 = vmax.f32 %v2094_v12, 0.0 }
 0x2b0   : > { %v4405_v25 = vpack.c.bf16 %v2280_v54, %v2279_v23 }
 0x2b1   : > { %v4407_v28 = vpack.c.bf16 %v2278_v21, %v2277_v26  ;;  %v3463_v63 = vpop.f32.mrb[112].mxu1 }
 0x2b2   : > { %v2115_v45 = vadd.f32 %v4384_v61, %v3463_v63  ;;  %v2106_v29 = vpop.f32.mrb[113].mxu1  ;;  %v2542_v59 = vsel %vm1431_vm2, %v4405_v25, 0 }
 0x2b3   : > { %v2107_v30 = vadd.f32 %v4384_v61, %v2106_v29  ;;  %v3464_v31 = vpop.f32.mrb[114].mxu1 }
 0x2b4   : > { %v2118_v27 = vadd.f32 %v4384_v61, %v3464_v31  ;;  %v2109_v33 = vpop.f32.mrb[115].mxu1  ;;  %3194 = vmatpush3.bf16.xpose.msra.mxu1 %v2494_v32  ;;  %v2283_v38 = vmax.f32 %v2115_v45, 0.0  ;;  %v2533_v31 = vsel %vm1431_vm2, %v4395_v11, 0  ;;  %v2536_v32 = vsel %vm1431_vm2, %v4393_v9, 0 }
 0x2b5   : > { %v2110_v37 = vadd.f32 %v4384_v61, %v2109_v33  ;;  %v2281_v10 = vmax.f32 %v2107_v30, 0.0  ;;  %v2369_v11 = vlaneseq }
 0x2b6   : > { %v2284_v53 = vmax.f32 %v2118_v27, 0.0 }
 0x2b7   : > { %v2282_v40 = vmax.f32 %v2110_v37, 0.0  ;;  %v2370_v27 = vshrl.u32 %v2369_v11, 7 }
 0x2b8   : > { %v2356_v41 = vpack.c.bf16 %v2284_v53, %v2283_v38 }
 0x2b9   : > { %v2355_v56 = vpack.c.bf16 %v2282_v40, %v2281_v10  ;;  %v3467_v44 = vpop.f32.mrb[116].mxu1  ;;  %v2371_v33 = vsub.s32 0, %v2370_v27 }
 0x2ba   : > { %v2131_v46 = vadd.f32 %v4384_v61, %v3467_v44  ;;  %v2122_v49 = vpop.f32.mrb[117].mxu1  ;;  %v3619_v44 = vmov 1966171168  }
 0x2bb   : > { %3502 = vmatprep.subr.msk.bf16.mxu0 %vm1431_vm2, %v2355_v56  ;;  %v2123_v50 = vadd.f32 %v4384_v61, %v2122_v49  ;;  %v3468_v36 = vpop.f32.mrb[118].mxu1  ;;  %3196 = vmatmul.mubr.msk.bf16.vlgmr.msra.gmra.mrb[132].mxu1 %vm1431_vm2, %v4174_v34 }
 0x2bc   : > { %3198 = vmatpush3.bf16.xpose.msra.mxu0 %v2521_v16  ;;  %v2287_v52 = vmax.f32 %v2131_v46, 0.0  ;;  %v2134_v39 = vadd.f32 %v4384_v61, %v3468_v36  ;;  %v2125_v51 = vpop.f32.mrb[119].mxu1  ;;  %v2745_v46 = vunpack.c.l.s4 %v3619_v44 }
 0x2bd   : > { %v2285_v55 = vmax.f32 %v2123_v50, 0.0  ;;  %3503 = vmatprep.subr.msk.bf16.mxu0 %vm1431_vm2, %v2356_v41  ;;  %v2126_v4 = vadd.f32 %v4384_v61, %v2125_v51 }
 0x2be   : > { %v2288_v57 = vmax.f32 %v2134_v39, 0.0  ;;  %v2746_v49 = vunpack.c.0.s8 %v2745_v46 }
 0x2bf   : > { %v2286_v58 = vmax.f32 %v2126_v4, 0.0 }
 0x2c0   : > { %v2358_v47 = vpack.c.bf16 %v2288_v57, %v2287_v52  ;;  %v2749_v16 = vsub.s32 %v2746_v49, %v2370_v27 }
 0x2c1   : > { %v2357_v42 = vpack.c.bf16 %v2286_v58, %v2285_v55  ;;  %v3471_v48 = vpop.f32.mrb[120].mxu1 }
 0x2c2   : > { %v2147_v62 = vadd.f32 %v4384_v61, %v3471_v48  ;;  %v2138_v19 = vpop.f32.mrb[121].mxu1 }
 0x2c3   : > { %v2139_v1 = vadd.f32 %v4384_v61, %v2138_v19  ;;  %v3472_v2 = vpop.f32.mrb[122].mxu1 }
 0x2c4   : > { %3200 = vmatpush3.bf16.xpose.msra.mxu0 %v2524_v0  ;;  %v2291_v5 = vmax.f32 %v2147_v62, 0.0  ;;  %v2150_v6 = vadd.f32 %v4384_v61, %v3472_v2  ;;  %v2141_v3 = vpop.f32.mrb[123].mxu1 }
 0x2c5   : > { %3504 = vmatprep.subr.msk.bf16.mxu0 %vm1431_vm2, %v2357_v42  ;;  %v2289_v35 = vmax.f32 %v2139_v1, 0.0  ;;  %v2142_v7 = vadd.f32 %v4384_v61, %v2141_v3 }
 0x2c6   : > { %v2292_v8 = vmax.f32 %v2150_v6, 0.0 }
 0x2c7   : > { %v2290_v43 = vmax.f32 %v2142_v7, 0.0 }
 0x2c8   : > { %v2360_v14 = vpack.c.bf16 %v2292_v8, %v2291_v5 }
 0x2c9   : > { %v2359_v13 = vpack.c.bf16 %v2290_v43, %v2289_v35  ;;  %v3475_v15 = vpop.f32.mrb[124].mxu1 }
 0x2ca   : > { %v2163_v22 = vadd.f32 %v4384_v61, %v3475_v15  ;;  %v2154_v17 = vpop.f32.mrb[125].mxu1 }
 0x2cb   : > { %v2155_v20 = vadd.f32 %v4384_v61, %v2154_v17  ;;  %v3476_v24 = vpop.f32.mrb[126].mxu1 }
 0x2cc   : > { %3202 = vmatpush3.bf16.xpose.msra.mxu0 %v2527_v18  ;;  %v2295_v12 = vmax.f32 %v2163_v22, 0.0  ;;  %v2166_v23 = vadd.f32 %v4384_v61, %v3476_v24  ;;  %v2157_v54 = vpop.f32.mrb[127].mxu1 }
 0x2cd   : > { %3505 = vmatprep.subr.msk.bf16.mxu0 %vm1431_vm2, %v2358_v47  ;;  %v2293_v26 = vmax.f32 %v2155_v20, 0.0  ;;  %v2158_v21 = vadd.f32 %v4384_v61, %v2157_v54  ;;  %v2539_v61 = vsel %vm1431_vm2, %v4407_v28, 0 }
 0x2ce   : > { %v2296_v63 = vmax.f32 %v2166_v23, 0.0 }
 0x2cf   : > { %v2294_v45 = vmax.f32 %v2158_v21, 0.0 }
 0x2d0   : > { %v2362_v29 = vpack.c.bf16 %v2296_v63, %v2295_v12 }
 0x2d1   : > { %v2361_v30 = vpack.c.bf16 %v2294_v45, %v2293_v26 }
 0x2d4   : > { %3204 = vmatpush3.bf16.xpose.msra.mxu0 %v2530_v60 }
 0x2d5   : > { %3506 = vmatprep.subr.msk.bf16.mxu0 %vm1431_vm2, %v2359_v13 }
 0x2dc   : > { %3206 = vmatpush3.bf16.xpose.msra.mxu0 %v2533_v31 }
 0x2dd   : > { %3507 = vmatprep.subr.msk.bf16.mxu0 %vm1431_vm2, %v2360_v14 }
 0x2e1   : > { %v2367_v9 = vpop.permute.xlu0 %2366 }
 0x2e2   : > { %v2372_v37 = vrot.slane %v2367_v9, %v2371_v33 }
 0x2e4   : > { %3208 = vmatpush3.bf16.xpose.msra.mxu0 %v2536_v32 }
 0x2e5   : > { %3508 = vmatprep.subr.msk.bf16.mxu0 %vm1431_vm2, %v2361_v30 }
 0x2ec   : > { %3210 = vmatpush3.bf16.xpose.msra.mxu0 %v2539_v61 }
 0x2ed   : > { %3509 = vmatprep.subr.msk.bf16.mxu0 %vm1431_vm2, %v2362_v29 }
 0x2f4   : > { %3212 = vmatpush3.bf16.xpose.msra.mxu0 %v2542_v59 }
 0x2fb   : > { %3214 = vmatmul.mubr.msk.bf16.vlgmr.msra.gmra.mrb[132].mxu0 %vm1431_vm2, %v4174_v34 }
 0x30e   : > { %v2602_v38 = vpop.f32.mrb[128].mxu1 }
 0x30f   : > { %v2604_v53 = vpop.f32.mrb[129].mxu1  ;;  %v2603_v40 = vadd.f32 %v2602_v38, %v2372_v37 }
 0x310   : > { %v2606_v10 = vpop.f32.mrb[130].mxu1  ;;  %v2605_v28 = vadd.f32 %v2604_v53, %v2372_v37 }
 0x311   : > { %v2607_v41 = vpop.f32.mrb[131].mxu1 }
 0x312   : > { %v2740_v56 = vcombine.low %v2603_v40, %v2605_v28 }
 0x314   : > { %v2750_v55 = vrot.slane %v2740_v56, %v2749_v16 }
 0x34e   : > { %v2643_v25 = vpop.f32.mrb[128].mxu0 }
 0x34f   : > { %v2645_v50 = vpop.f32.mrb[129].mxu0  ;;  %v2644_v36 = vadd.f32 %v2643_v25, %v2372_v37 }
 0x350   : > { %v2647_v34 = vpop.f32.mrb[130].mxu0  ;;  %v2646_v52 = vadd.f32 %v2645_v50, %v2372_v37 }
 0x351   : > { %v2648_v39 = vpop.f32.mrb[131].mxu0 }
 0x352   : > { %v2741_v51 = vcombine.low %v2644_v36, %v2646_v52 }
 0x354   : > { %v2757_v4 = vrot.slane %v2741_v51, %v2749_v16 }
 0x356   : > { %v2772_v57 = vcombine.low %v2750_v55, %v2757_v4 }
 0x358   : > { %v2780_v13 = vrot.slane %v2772_v57, %v2749_v16 }
 0x38e   : > { %v2684_v58 = vpop.f32.mrb[132].mxu1 }
 0x38f   : > { %v2685_v47 = vadd.f32 %v2684_v58, %v2372_v37  ;;  %v2686_v42 = vpop.f32.mrb[133].mxu1 }
 0x390   : > { %v2687_v48 = vadd.f32 %v2686_v42, %v2372_v37  ;;  %v2688_v62 = vpop.f32.mrb[134].mxu1 }
 0x391   : > { %v2689_v19 = vpop.f32.mrb[135].mxu1 }
 0x392   : > { %v2742_v0 = vcombine.low %v2685_v47, %v2687_v48 }
 0x394   : > { %v2764_v7 = vrot.slane %v2742_v0, %v2749_v16 }
 0x3ce   : > { %v2725_v1 = vpop.f32.mrb[132].mxu0 }
 0x3cf   : > { %v2726_v2 = vadd.f32 %v2725_v1, %v2372_v37  ;;  %v2727_v5 = vpop.f32.mrb[133].mxu0 }
 0x3d0   : > { %v2728_v6 = vadd.f32 %v2727_v5, %v2372_v37  ;;  %v2729_v3 = vpop.f32.mrb[134].mxu0 }
 0x3d1   : > { %v2730_v35 = vpop.f32.mrb[135].mxu0 }
 0x3d2   : > { %v2743_v8 = vcombine.low %v2726_v2, %v2728_v6 }
 0x3d4   : > { %v2771_v43 = vrot.slane %v2743_v8, %v2749_v16 }
 0x3d6   : > { %v2773_v14 = vcombine.low %v2764_v7, %v2771_v43 }
 0x3d8   : > { %v2787_v15 = vrot.slane %v2773_v14, %v2749_v16 }
 0x3da   : > { %v2788_v22 = vcombine.low %v2780_v13, %v2787_v15 }
 0x3dc   : > { %2790 = vst [vmem:[%s274_s10] sm:$0xff] %v2788_v22 }
 0x3dd   : > { %3567 = shalt.err (!%p3564_p3)
}
 0x3de   : > { %s3568_s20 = scalar_lea.hbm %s4460_s17, 128  ;;  %s3572_s30 = scalar_lea.hbm %s4509_s7, 256 }
 0x3df   : > { %p3569_p4 = scmp.ne.s32.totalorder %s4460_s17, %s3568_s20  ;;  %p3573_p9 = scmp.lt.u32.totalorder %s4460_s17, %s4509_s7 }
 0x3e0   : > { %p3574_p10 = scmp.lt.u32.totalorder %s3572_s30, %s3568_s20  ;;  %p3576_p12 = scmp.lt.u32.totalorder %s3568_s20, %s4460_s17 }
 0x3e1   : > { %p3570_p7 = pnand %p3569_p4, %p3699_p5 }
 0x3e2   : > { %p3575_p11 = por %p3574_p10, %p3573_p9 }
 0x3e3   : > { %p3571_p8 = pneg %p3570_p7 }
 0x3e4   : > { %p3577_p13 = por %p3576_p12, %p3575_p11 }
 0x3e6   : > { %p3578_p0 = pnand %p3577_p13, %p3571_p8 }
 0x3e8   : > { %3581 = shalt.err (!%p3578_p0)
}
 0x3e9   : > { %3510 = dma.vmem_to_hbm [thread:$0]  (%p3699_p5), %s4462_s14, 128, %s4460_s17, %s2792_s18  }
 0x3ea PF: > { %p3516_p1 = scmp.ge.s32.totalorder %s3616_s29, 2  ;;  %s2818_s10 = sand.u32 1, %s3604_s26  }
 0x3eb   : > { %s2819_s15 = scalar_lea.sflag [#allocation4], %s2818_s10 }
 0x3ec   : > { %p3513_p2 = pnand %p3516_p1, %p3703_p6 }
 0x3ee   : > { %3599 = dma.done.wait (!%p3513_p2), %s2819_s15, 128  }
 0x3ef   : > { %3601 = vsyncadd (!%p3513_p2), %s2819_s15, 4294967168  ;;  %p19_p3 = scmp.ge.s32.totalorder %s3687_s8, 4   ;;  %s4512_s26 = smov %s3608_s27 }
 0x3f0   : > { %s4513_s27 = smov %s3612_s28  ;;  %s4514_s28 = smov %s3697_s11 }
 0x3f1   : > { %s4515_s29 = smov %s3687_s8  ;;  %21 = sbr.rel (!%p19_p3) target bundleno = 6 (0x6), region = 83 }
 0x3f8   :  { %2824 = vsyncpa [#allocation4], 1 }
 0x3f9   :  { %2826 = vsyncpa [#allocation4 + $0x1], 1 }

</bundles_post_ra>
